<compile_context>
chip_gen: v7x
topology: tpu7x:2x2x1
jax: 0.10.0
libtpu: 0.0.40
codegen_flags: <defaults>
</compile_context>

<pallas_src>
import functools

import jax
import jax.numpy as jnp
from jax.experimental import pallas as pl
from jax.experimental.pallas import tpu as pltpu


def _round_up(x, m):
    return (x + m - 1) // m * m


# ----------------------------------------------------------------------------
# Kernel 1: conv-as-matmul (bf16 MXU, f32 accumulate) + per-block partial
#           batch statistics (feeds training-mode BatchNorm).
# ----------------------------------------------------------------------------
def conv_stats_kernel(p_ref, w_ref, y_ref, psum_ref, pssq_ref):
    y = jnp.dot(p_ref[...], w_ref[...], preferred_element_type=jnp.float32)
    y_ref[...] = y.astype(y_ref.dtype)
    tm, cp = y.shape
    # 8-sublane partial accumulators: reduce only over the free leading axis
    # (VPU adds); the final cross-sublane collapse happens once in the glue.
    y8 = y.reshape(tm // 8, 8, cp)
    psum_ref[...] = jnp.sum(y8, axis=0)
    pssq_ref[...] = jnp.sum(y8 * y8, axis=0)


# ----------------------------------------------------------------------------
# Kernel 2: BN affine (precomputed scale/shift) + ReLU + NHWC->NCHW transpose.
# ----------------------------------------------------------------------------
def bn_relu_t_kernel(y_ref, scale_ref, shift_ref, o_ref):
    y = y_ref[...].astype(jnp.float32)                            # (tm, Cp)
    z = jnp.maximum(y * scale_ref[...] + shift_ref[...], 0.0)     # (tm, Cp)
    o_ref[...] = jnp.transpose(z).astype(o_ref.dtype)             # (Cp, tm)


def _im2col(x, K, stride):
    """x: (N, Cin, H, W) -> patches (N, Ho*Wo, Cin*K*K), feature order (Cin, kh, kw)."""
    N, Cin, H, W = x.shape
    p = K // 2
    xp = jnp.pad(x, ((0, 0), (0, 0), (p, p), (p, p)))
    Ho = (H + 2 * p - K) // stride + 1
    Wo = (W + 2 * p - K) // stride + 1
    slabs = []
    for kh in range(K):
        for kw in range(K):
            slabs.append(
                xp[:, :, kh:kh + stride * Ho:stride, kw:kw + stride * Wo:stride])
    pat = jnp.stack(slabs, axis=0)                # (K*K, N, Cin, Ho, Wo)
    pat = jnp.transpose(pat, (1, 3, 4, 2, 0))     # (N, Ho, Wo, Cin, K*K)
    return pat.reshape(N, Ho * Wo, Cin * K * K), Ho, Wo


@functools.partial(jax.jit,
                   static_argnames=("kernel_size", "stride", "eps", "tm"))
def conv_module_forward(x, weight, gamma, beta, *, kernel_size, stride=1,
                        eps=1e-5, tm=512):
    """Forward of ConvModule. x: (N, Cin, H, W) NCHW, weight: (Cout, Cin, K, K)."""
    N, Cin, H, W = x.shape
    Cout = weight.shape[0]
    K = kernel_size
    Kdim = Cin * K * K

    pat, Ho, Wo = _im2col(x, K, stride)            # (N, Ho*Wo, Kdim) f32
    HoWo = Ho * Wo

    # Lane-dense / tile-dense padding (all zero-filled).
    Kp = _round_up(Kdim, 128)
    Cp = _round_up(Cout, 128)
    HoWo_p = _round_up(HoWo, tm)
    M_pad = N * HoWo_p
    G = M_pad // tm

    pat = jnp.pad(pat, ((0, 0), (0, HoWo_p - HoWo), (0, Kp - Kdim)))
    patches = pat.reshape(M_pad, Kp).astype(jnp.bfloat16)

    w2d = weight.reshape(Cout, Kdim).T                               # (Kdim, Cout)
    w2d = jnp.pad(w2d, ((0, Kp - Kdim), (0, Cp - Cout))).astype(jnp.bfloat16)

    gamma_p = jnp.pad(gamma.astype(jnp.float32), (0, Cp - Cout),
                      constant_values=1.0)
    beta_p = jnp.pad(beta.astype(jnp.float32), (0, Cp - Cout))

    vmem_budget = 32 * 1024 * 1024   # well under v7x's 64 MiB physical VMEM

    # ---- Pass 1: conv matmul + per-block partial batch statistics -----------
    y, psum, pssq = pl.pallas_call(
        conv_stats_kernel,
        out_shape=(
            jax.ShapeDtypeStruct((M_pad, Cp), jnp.bfloat16),
            jax.ShapeDtypeStruct((G, 8, Cp), jnp.float32),
            jax.ShapeDtypeStruct((G, 8, Cp), jnp.float32),
        ),
        grid_spec=pltpu.PrefetchScalarGridSpec(
            num_scalar_prefetch=0,
            grid=(G,),
            in_specs=[
                pl.BlockSpec((tm, Kp), lambda i: (i, 0)),
                pl.BlockSpec((Kp, Cp), lambda i: (0, 0)),
            ],
            out_specs=[
                pl.BlockSpec((tm, Cp), lambda i: (i, 0)),
                pl.BlockSpec((None, 8, Cp), lambda i: (i, 0, 0)),
                pl.BlockSpec((None, 8, Cp), lambda i: (i, 0, 0)),
            ],
        ),
        compiler_params=pltpu.CompilerParams(
            dimension_semantics=("parallel",),      # no cross-step carry -> megacore OK
            vmem_limit_bytes=vmem_budget),
    )(patches, w2d)

    # ---- Tiny scalar glue: batch stats -> BN scale / shift ------------------
    m_true = jnp.float32(N * HoWo)                  # padded rows contribute 0
    csum = jnp.sum(psum, axis=(0, 1))               # (Cp,)
    cssq = jnp.sum(pssq, axis=(0, 1))
    mean = csum / m_true
    var = jnp.maximum(cssq / m_true - mean * mean, 0.0)   # biased (training BN)
    inv_std = jax.lax.rsqrt(var + eps)
    scale = (gamma_p * inv_std)[None, :]            # (1, Cp)
    shift = (beta_p - mean * gamma_p * inv_std)[None, :]

    # ---- Pass 2: fused BN affine + ReLU + NHWC->NCHW transpose --------------
    y3 = y.reshape(N, HoWo_p, Cp)                   # free (contiguous) reshape
    out_pad = pl.pallas_call(
        bn_relu_t_kernel,
        out_shape=jax.ShapeDtypeStruct((N, Cp, HoWo_p), jnp.float32),
        grid_spec=pltpu.PrefetchScalarGridSpec(
            num_scalar_prefetch=0,
            grid=(N, HoWo_p // tm),
            in_specs=[
                pl.BlockSpec((None, tm, Cp), lambda n, j: (n, j, 0)),
                pl.BlockSpec((1, Cp), lambda n, j: (0, 0)),
                pl.BlockSpec((1, Cp), lambda n, j: (0, 0)),
            ],
            out_specs=pl.BlockSpec((None, Cp, tm), lambda n, j: (n, 0, j)),
        ),
        compiler_params=pltpu.CompilerParams(
            dimension_semantics=("parallel", "parallel"),
            vmem_limit_bytes=vmem_budget),
    )(y3, scale, shift)

    # Drop channel/spatial padding; trailing reshape is free (Ho*Wo contiguous).
    out = out_pad[:, :Cout, :HoWo].reshape(N, Cout, Ho, Wo)
    return out


def _reference(x, weight, gamma, beta, *, stride, eps=1e-5):
    """Pure-JAX f32 reference for correctness checking."""
    K = weight.shape[-1]
    p = K // 2
    y = jax.lax.conv_general_dilated(
        x, weight, window_strides=(stride, stride),
        padding=[(p, p), (p, p)],
        dimension_numbers=("NCHW", "OIHW", "NCHW"))
    mean = jnp.mean(y, axis=(0, 2, 3), keepdims=True)
    var = jnp.var(y, axis=(0, 2, 3), keepdims=True)     # biased, training BN
    yn = (y - mean) * jax.lax.rsqrt(var + eps)
    yn = yn * gamma[None, :, None, None] + beta[None, :, None, None]
    return jnp.maximum(yn, 0.0)


if __name__ == "__main__":
    # Small shapes consistent with the module: N=2, Cin=4, Cout=8, H=W=16, K=3.
    N, Cin, Cout, H, W, K, stride = 2, 4, 8, 16, 16, 3, 1

    key = jax.random.PRNGKey(0)
    kx, kw = jax.random.split(key)
    x = jax.random.normal(kx, (N, Cin, H, W), dtype=jnp.float32)
    weight = jax.random.normal(kw, (Cout, Cin, K, K), dtype=jnp.float32) * 0.1
    # BatchNorm2d default init: gamma=1, beta=0 (running stats unused for output).
    gamma = jnp.ones((Cout,), dtype=jnp.float32)
    beta = jnp.zeros((Cout,), dtype=jnp.float32)

    out = conv_module_forward(x, weight, gamma, beta,
                              kernel_size=K, stride=stride)
    out = jax.block_until_ready(out)

    ref = _reference(x, weight, gamma, beta, stride=stride)
    assert out.shape == (N, Cout, H, W), out.shape
    max_err = float(jnp.max(jnp.abs(out - ref)))
    # bf16 streaming of patches / weights / y => bf16-level tolerance vs f32 ref.
    assert jnp.allclose(out, ref, atol=5e-2, rtol=5e-2), max_err
    print("KERNEL_OK")
</pallas_src>

<mosaic_0001>
module attributes {stable_mosaic.version = 11 : i64} {
  func.func @conv_stats_kernel(%arg0: i32, %arg1: memref<512x128xbf16, #tpu.memory_space<vmem>>, %arg2: memref<128x128xbf16, #tpu.memory_space<vmem>>, %arg3: memref<512x128xbf16, #tpu.memory_space<vmem>>, %arg4: memref<1x8x128xf32, #tpu.memory_space<vmem>>, %arg5: memref<1x8x128xf32, #tpu.memory_space<vmem>>) attributes {dimension_semantics = [#tpu.dimension_semantics<parallel>], iteration_bounds = array<i64: 2>, scalar_prefetch = 0 : i64, scratch_operands = 0 : i64, tpu.core_type = #tpu.core_type<tc>, window_params = [{transform_indices = @transform_0, window_bounds = array<i64: 512, 128>}, {pipeline_mode = #tpu.pipeline_mode<synchronous>, transform_indices = @transform_1, window_bounds = array<i64: 128, 128>}, {transform_indices = @transform_2, window_bounds = array<i64: 512, 128>}, {transform_indices = @transform_3, window_bounds = array<i64: 1, 8, 128>}, {transform_indices = @transform_4, window_bounds = array<i64: 1, 8, 128>}]} {
    %c0 = arith.constant 0 : index
    %c0_0 = arith.constant 0 : index
    %0 = vector.load %arg1[%c0, %c0_0] : memref<512x128xbf16, #tpu.memory_space<vmem>>, vector<512x128xbf16>
    %c0_1 = arith.constant 0 : index
    %c0_2 = arith.constant 0 : index
    %1 = vector.load %arg2[%c0_1, %c0_2] : memref<128x128xbf16, #tpu.memory_space<vmem>>, vector<128x128xbf16>
    %cst = arith.constant dense<0.000000e+00> : vector<512x128xf32>
    %2 = tpu.matmul %0, %1, %cst {dimension_numbers = #tpu.dot_dimension_numbers<[1], [0], [0], [1], [0, 0, 1, 1], [], []>} : vector<512x128xbf16>, vector<128x128xbf16>, vector<512x128xf32> -> vector<512x128xf32>
    %3 = arith.truncf %2 : vector<512x128xf32> to vector<512x128xbf16>
    %c0_3 = arith.constant 0 : index
    %c0_4 = arith.constant 0 : index
    %4 = vector.load %arg3[%c0_3, %c0_4] : memref<512x128xbf16, #tpu.memory_space<vmem>>, vector<512x128xbf16>
    tpu.vector_store %arg3[%c0_3, %c0_4], %3 {strides = array<i32>} : memref<512x128xbf16, #tpu.memory_space<vmem>>, vector<512x128xbf16>,
    %5 = vector.shape_cast %2 : vector<512x128xf32> to vector<64x8x128xf32>
    %cst_5 = arith.constant dense<0.000000e+00> : vector<8x128xf32>
    %6 = vector.multi_reduction <add>, %5, %cst_5 [0] : vector<64x8x128xf32> to vector<8x128xf32>
    %c0_6 = arith.constant 0 : index
    %c0_7 = arith.constant 0 : index
    %c0_8 = arith.constant 0 : index
    %7 = vector.load %arg4[%c0_6, %c0_7, %c0_8] : memref<1x8x128xf32, #tpu.memory_space<vmem>>, vector<1x8x128xf32>
    %8 = vector.shape_cast %7 : vector<1x8x128xf32> to vector<8x128xf32>
    %9 = vector.shape_cast %6 : vector<8x128xf32> to vector<1x8x128xf32>
    tpu.vector_store %arg4[%c0_6, %c0_7, %c0_8], %9 {strides = array<i32>} : memref<1x8x128xf32, #tpu.memory_space<vmem>>, vector<1x8x128xf32>,
    %10 = arith.mulf %5, %5 : vector<64x8x128xf32>
    %cst_9 = arith.constant dense<0.000000e+00> : vector<8x128xf32>
    %11 = vector.multi_reduction <add>, %10, %cst_9 [0] : vector<64x8x128xf32> to vector<8x128xf32>
    %c0_10 = arith.constant 0 : index
    %c0_11 = arith.constant 0 : index
    %c0_12 = arith.constant 0 : index
    %12 = vector.load %arg5[%c0_10, %c0_11, %c0_12] : memref<1x8x128xf32, #tpu.memory_space<vmem>>, vector<1x8x128xf32>
    %13 = vector.shape_cast %12 : vector<1x8x128xf32> to vector<8x128xf32>
    %14 = vector.shape_cast %11 : vector<8x128xf32> to vector<1x8x128xf32>
    tpu.vector_store %arg5[%c0_10, %c0_11, %c0_12], %14 {strides = array<i32>} : memref<1x8x128xf32, #tpu.memory_space<vmem>>, vector<1x8x128xf32>,
    return
  }
  func.func @transform_0(%arg0: i32) -> (i32, i32) {
    %c0_i32 = arith.constant 0 : i32
    %c0_i32_0 = arith.constant 0 : i32
    return %arg0, %c0_i32 : i32, i32
  }
  func.func @transform_1(%arg0: i32) -> (i32, i32) {
    %c0_i32 = arith.constant 0 : i32
    %c0_i32_0 = arith.constant 0 : i32
    %c0_i32_1 = arith.constant 0 : i32
    return %c0_i32, %c0_i32_0 : i32, i32
  }
  func.func @transform_2(%arg0: i32) -> (i32, i32) {
    %c0_i32 = arith.constant 0 : i32
    %c0_i32_0 = arith.constant 0 : i32
    return %arg0, %c0_i32 : i32, i32
  }
  func.func @transform_3(%arg0: i32) -> (i32, i32, i32) {
    %c0_i32 = arith.constant 0 : i32
    %c0_i32_0 = arith.constant 0 : i32
    %c0_i32_1 = arith.constant 0 : i32
    return %arg0, %c0_i32, %c0_i32_0 : i32, i32, i32
  }
  func.func @transform_4(%arg0: i32) -> (i32, i32, i32) {
    %c0_i32 = arith.constant 0 : i32
    %c0_i32_0 = arith.constant 0 : i32
    %c0_i32_1 = arith.constant 0 : i32
    return %arg0, %c0_i32, %c0_i32_0 : i32, i32, i32
  }
}

module attributes {stable_mosaic.version = 11 : i64} {
  func.func @bn_relu_t_kernel(%arg0: i32, %arg1: i32, %arg2: memref<1x512x128xbf16, #tpu.memory_space<vmem>>, %arg3: memref<1x128xf32, #tpu.memory_space<vmem>>, %arg4: memref<1x128xf32, #tpu.memory_space<vmem>>, %arg5: memref<1x128x512xf32, #tpu.memory_space<vmem>>) attributes {dimension_semantics = [#tpu.dimension_semantics<parallel>, #tpu.dimension_semantics<parallel>], iteration_bounds = array<i64: 2, 1>, scalar_prefetch = 0 : i64, scratch_operands = 0 : i64, tpu.core_type = #tpu.core_type<tc>, window_params = [{transform_indices = @transform_0, window_bounds = array<i64: 1, 512, 128>}, {pipeline_mode = #tpu.pipeline_mode<synchronous>, transform_indices = @transform_1, window_bounds = array<i64: 1, 128>}, {pipeline_mode = #tpu.pipeline_mode<synchronous>, transform_indices = @transform_2, window_bounds = array<i64: 1, 128>}, {transform_indices = @transform_3, window_bounds = array<i64: 1, 128, 512>}]} {
    %c0 = arith.constant 0 : index
    %c0_0 = arith.constant 0 : index
    %c0_1 = arith.constant 0 : index
    %0 = vector.load %arg2[%c0, %c0_0, %c0_1] : memref<1x512x128xbf16, #tpu.memory_space<vmem>>, vector<1x512x128xbf16>
    %1 = vector.shape_cast %0 : vector<1x512x128xbf16> to vector<512x128xbf16>
    %2 = arith.extf %1 : vector<512x128xbf16> to vector<512x128xf32>
    %c0_2 = arith.constant 0 : index
    %c0_3 = arith.constant 0 : index
    %3 = vector.load %arg3[%c0_2, %c0_3] : memref<1x128xf32, #tpu.memory_space<vmem>>, vector<1x128xf32>
    %4 = vector.broadcast %3 : vector<1x128xf32> to vector<512x128xf32>
    %5 = arith.mulf %2, %4 : vector<512x128xf32>
    %c0_4 = arith.constant 0 : index
    %c0_5 = arith.constant 0 : index
    %6 = vector.load %arg4[%c0_4, %c0_5] : memref<1x128xf32, #tpu.memory_space<vmem>>, vector<1x128xf32>
    %7 = vector.broadcast %6 : vector<1x128xf32> to vector<512x128xf32>
    %8 = arith.addf %5, %7 : vector<512x128xf32>
    %cst = arith.constant 0.000000e+00 : f32
    %9 = vector.broadcast %cst : f32 to vector<512x128xf32>
    %10 = arith.maximumf %8, %9 : vector<512x128xf32>
    %11 = tpu.transpose %10, [1, 0] : vector<512x128xf32> -> vector<128x512xf32>
    %c0_6 = arith.constant 0 : index
    %c0_7 = arith.constant 0 : index
    %c0_8 = arith.constant 0 : index
    %12 = vector.load %arg5[%c0_6, %c0_7, %c0_8] : memref<1x128x512xf32, #tpu.memory_space<vmem>>, vector<1x128x512xf32>
    %13 = vector.shape_cast %12 : vector<1x128x512xf32> to vector<128x512xf32>
    %14 = vector.shape_cast %11 : vector<128x512xf32> to vector<1x128x512xf32>
    tpu.vector_store %arg5[%c0_6, %c0_7, %c0_8], %14 {strides = array<i32>} : memref<1x128x512xf32, #tpu.memory_space<vmem>>, vector<1x128x512xf32>,
    return
  }
  func.func @transform_0(%arg0: i32, %arg1: i32) -> (i32, i32, i32) {
    %c0_i32 = arith.constant 0 : i32
    %c0_i32_0 = arith.constant 0 : i32
    return %arg0, %arg1, %c0_i32 : i32, i32, i32
  }
  func.func @transform_1(%arg0: i32, %arg1: i32) -> (i32, i32) {
    %c0_i32 = arith.constant 0 : i32
    %c0_i32_0 = arith.constant 0 : i32
    %c0_i32_1 = arith.constant 0 : i32
    return %c0_i32, %c0_i32_0 : i32, i32
  }
  func.func @transform_2(%arg0: i32, %arg1: i32) -> (i32, i32) {
    %c0_i32 = arith.constant 0 : i32
    %c0_i32_0 = arith.constant 0 : i32
    %c0_i32_1 = arith.constant 0 : i32
    return %c0_i32, %c0_i32_0 : i32, i32
  }
  func.func @transform_3(%arg0: i32, %arg1: i32) -> (i32, i32, i32) {
    %c0_i32 = arith.constant 0 : i32
    %c0_i32_0 = arith.constant 0 : i32
    return %arg0, %c0_i32, %arg1 : i32, i32, i32
  }
}

</mosaic_0001>

<bundles_post_ra>
// kernel: conv_module_forward.3
= control target key start
LH: loop header
LB: loop body
LE: loop exit
PB: predicated region body
PF: predicated region fallthrough
CT: control target
= control target key end

     0   :  { %s1065_s12 = smov 0   ;;  %s1067_s13 = smov 0   ;;  %s1491_s0 = inlined_call_operand.vmem [shape: bf16[2,512,128], index: 0, kind: input, shape index: {}]   ;;  %s1492_s1 = inlined_call_operand.vmem [shape: f32[1,128], index: 1, kind: input, shape index: {}]   ;;  %s1493_s2 = inlined_call_operand.vmem [shape: f32[1,128], index: 2, kind: input, shape index: {}]   ;;  %s1494_s3 = inlined_call_operand.vmem [shape: f32[2,128,512], index: 3, kind: output, shape index: {}]  }
   0x1   :  { %s1069_s14 = smov 0  }
   0x2 LB: > { %s25_s15 = sadd.s32 1, %s1039_s13  ;;  %p827_p0 = scmp.ge.s32.totalorder %s1043_s14, 1  ;;  %s1043_s14 = sphi %s1069_s14, %s13_s14   ;;  %s1039_s13 = sphi %s1067_s13, %s1496_s13   ;;  %s1035_s12 = sphi %s1065_s12, %s1495_s12  }
   0x3   : > { %p27_p1 = scmp.ge.s32.totalorder %s25_s15, 2  ;;  %p158_p2 = scmp.lt.s32.totalorder %s1043_s14, 3 }
   0x5   : > { %s1498_s15 = smov (%p27_p1, %s25_s15), 0  ;;  %p159_p3 = pnand %p827_p0, %p158_p2 }
   0x6   : > { %p191_p4 = scmp.lt.s32.totalorder (!%p159_p3), %s1035_s12, 1  ;;  %v1094_v0 = vld [vmem:[%s1492_s1] ss:$0 sm:$0xff] (!%p159_p3) }
   0x7   : > { %162 = sbr.rel (%p159_p3) target bundleno = 281 (0x119), region = 32  ;;  %v1103_v9 = vld [vmem:[%s1493_s2] ss:$0 sm:$0xff] (!%p159_p3) }
   0xe   : > { %s1500_s12 = smov (!%p191_p4, %s1035_s12), 1 }
   0xf   : > { %s836_s16 = sshll.u32 %s1500_s12, 8  ;;  %s837_s24 = sshll.u32 %s1500_s12, 9 }
  0x10   : > { %s1089_s19 = scalar_lea.vmem %s1491_s0, %s836_s16  ;;  %s1416_s27 = scalar_lea.vmem %s1494_s3, %s837_s24 }
  0x11   : > { %v973_v1 = vld [vmem:[%s1089_s19 + $0x40] sm:$0xff]   ;;  %v974_v3 = vld [vmem:[%s1089_s19 + $0x48] sm:$0xff]   ;;  %v975_v24 = vld [vmem:[%s1089_s19 + $0x50] sm:$0xff]  }
  0x12   : > { %v839_v2 = vld [vmem:[%s1089_s19] sm:$0xff]   ;;  %v872_v4 = vunpack.c.l.bf16 %v973_v1  ;;  %v873_v6 = vunpack.c.h.bf16 %v973_v1  ;;  %v966_v8 = vld [vmem:[%s1089_s19 + $0x8] sm:$0xff]   ;;  %v876_v10 = vunpack.c.l.bf16 %v974_v3  ;;  %v877_v12 = vunpack.c.h.bf16 %v974_v3  ;;  %v967_v25 = vld [vmem:[%s1089_s19 + $0x10] sm:$0xff]  }
  0x13   : > { %v840_v5 = vunpack.c.l.bf16 %v839_v2  ;;  %v841_v7 = vunpack.c.h.bf16 %v839_v2  ;;  %v844_v11 = vunpack.c.l.bf16 %v966_v8  ;;  %v845_v13 = vunpack.c.h.bf16 %v966_v8  ;;  %v976_v40 = vld [vmem:[%s1089_s19 + $0x58] sm:$0xff]   ;;  %v977_v46 = vld [vmem:[%s1089_s19 + $0x60] sm:$0xff]   ;;  %v978_v52 = vld [vmem:[%s1089_s19 + $0x68] sm:$0xff]  }
  0x14   : > { %v361_v14 = vmul.f32 %v872_v4, %v1094_v0  ;;  %v362_v16 = vmul.f32 %v873_v6, %v1094_v0  ;;  %v363_v18 = vmul.f32 %v876_v10, %v1094_v0  ;;  %v364_v28 = vmul.f32 %v877_v12, %v1094_v0  ;;  %v968_v41 = vld [vmem:[%s1089_s19 + $0x18] sm:$0xff]   ;;  %v969_v47 = vld [vmem:[%s1089_s19 + $0x20] sm:$0xff]   ;;  %v970_v57 = vld [vmem:[%s1089_s19 + $0x28] sm:$0xff]  }
  0x15   : > { %v345_v15 = vmul.f32 %v840_v5, %v1094_v0  ;;  %v346_v17 = vmul.f32 %v841_v7, %v1094_v0  ;;  %v347_v19 = vmul.f32 %v844_v11, %v1094_v0  ;;  %v348_v29 = vmul.f32 %v845_v13, %v1094_v0 }
  0x16   : > { %v432_v20 = vadd.f32 %v1103_v9, %v361_v14  ;;  %v433_v22 = vadd.f32 %v1103_v9, %v362_v16  ;;  %v434_v30 = vadd.f32 %v1103_v9, %v363_v18  ;;  %v880_v34 = vunpack.c.l.bf16 %v975_v24 }
  0x17   : > { %v416_v21 = vadd.f32 %v1103_v9, %v345_v15  ;;  %v417_v23 = vadd.f32 %v1103_v9, %v346_v17  ;;  %v418_v31 = vadd.f32 %v1103_v9, %v347_v19  ;;  %v848_v35 = vunpack.c.l.bf16 %v967_v25 }
  0x18   : > { %v496_v26 = vmax.f32 %v432_v20, 0.0  ;;  %v497_v32 = vmax.f32 %v433_v22, 0.0  ;;  %v435_v36 = vadd.f32 %v1103_v9, %v364_v28  ;;  %v419_v37 = vadd.f32 %v1103_v9, %v348_v29 }
  0x19   : > { %v480_v27 = vmax.f32 %v416_v21, 0.0  ;;  %v481_v33 = vmax.f32 %v417_v23, 0.0  ;;  %v881_v38 = vunpack.c.h.bf16 %v975_v24  ;;  %v849_v39 = vunpack.c.h.bf16 %v967_v25  ;;  %v1152_v25 = vld [vmem:[%s1089_s19 + $0x70] sm:$0xff]  }
  0x1a   : > { %576 = vxpose.xlu1.b32.start [1/16] %v496_v26, 128  ;;  %v498_v42 = vmax.f32 %v434_v30, 0.0  ;;  %v482_v43 = vmax.f32 %v418_v31, 0.0  ;;  %v365_v44 = vmul.f32 %v880_v34, %v1094_v0  ;;  %v349_v45 = vmul.f32 %v848_v35, %v1094_v0 }
  0x1b   : > { %544 = vxpose.xlu0.b32.start [1/16] %v480_v27, 128  ;;  %v499_v48 = vmax.f32 %v435_v36, 0.0  ;;  %v483_v49 = vmax.f32 %v419_v37, 0.0  ;;  %v884_v50 = vunpack.c.l.bf16 %v976_v40  ;;  %v852_v51 = vunpack.c.l.bf16 %v968_v41 }
  0x1c   : > { %v366_v53 = vmul.f32 %v881_v38, %v1094_v0  ;;  %v350_v54 = vmul.f32 %v849_v39, %v1094_v0  ;;  %v885_v55 = vunpack.c.h.bf16 %v976_v40  ;;  %v853_v56 = vunpack.c.h.bf16 %v968_v41  ;;  %v989_v39 = vld [vmem:[%s1089_s19 + $0xc0] sm:$0xff]  }
  0x1d   : > { %v436_v58 = vadd.f32 %v1103_v9, %v365_v44  ;;  %v420_v59 = vadd.f32 %v1103_v9, %v349_v45  ;;  %v888_v60 = vunpack.c.l.bf16 %v977_v46  ;;  %v856_v61 = vunpack.c.l.bf16 %v969_v47  ;;  %v971_v44 = vld [vmem:[%s1089_s19 + $0x30] sm:$0xff]   ;;  %v1183_v45 = vld [vmem:[%s1089_s19 + $0x78] sm:$0xff]  }
  0x1e   : > { %577 = vxpose.xlu1.b32.cont [2/16] %v497_v32, 128  ;;  %v889_v62 = vunpack.c.h.bf16 %v977_v46  ;;  %v857_v63 = vunpack.c.h.bf16 %v969_v47  ;;  %v892_v1 = vunpack.c.l.bf16 %v978_v52  ;;  %v367_v2 = vmul.f32 %v884_v50, %v1094_v0  ;;  %v1192_v50 = vld [vmem:[%s1089_s19 + $0x38] sm:$0xff]  }
  0x1f   : > { %545 = vxpose.xlu0.b32.cont [2/16] %v481_v33, 128  ;;  %v351_v3 = vmul.f32 %v852_v51, %v1094_v0  ;;  %v860_v4 = vunpack.c.l.bf16 %v970_v57  ;;  %v893_v5 = vunpack.c.h.bf16 %v978_v52  ;;  %v437_v6 = vadd.f32 %v1103_v9, %v366_v53  ;;  %v981_v51 = vld [vmem:[%s1089_s19 + $0x80] sm:$0xff]  }
  0x20   : > { %v421_v7 = vadd.f32 %v1103_v9, %v350_v54  ;;  %v368_v8 = vmul.f32 %v885_v55, %v1094_v0  ;;  %v352_v10 = vmul.f32 %v853_v56, %v1094_v0  ;;  %v500_v11 = vmax.f32 %v436_v58, 0.0  ;;  %v990_v56 = vld [vmem:[%s1089_s19 + $0xc8] sm:$0xff]  }
  0x21   : > { %v484_v12 = vmax.f32 %v420_v59, 0.0  ;;  %v369_v13 = vmul.f32 %v888_v60, %v1094_v0  ;;  %v353_v14 = vmul.f32 %v856_v61, %v1094_v0  ;;  %v370_v15 = vmul.f32 %v889_v62, %v1094_v0 }
  0x22   : > { %578 = vxpose.xlu1.b32.cont [3/16] %v498_v42, 128  ;;  %v354_v16 = vmul.f32 %v857_v63, %v1094_v0  ;;  %v371_v17 = vmul.f32 %v892_v1, %v1094_v0  ;;  %v861_v18 = vunpack.c.h.bf16 %v970_v57  ;;  %v355_v19 = vmul.f32 %v860_v4, %v1094_v0  ;;  %v982_v57 = vld [vmem:[%s1089_s19 + $0x88] sm:$0xff]  }
  0x23   : > { %546 = vxpose.xlu0.b32.cont [3/16] %v482_v43, 128  ;;  %v372_v20 = vmul.f32 %v893_v5, %v1094_v0  ;;  %v501_v21 = vmax.f32 %v437_v6, 0.0  ;;  %v438_v22 = vadd.f32 %v1103_v9, %v367_v2  ;;  %v422_v23 = vadd.f32 %v1103_v9, %v351_v3 }
  0x24   : > { %v439_v24 = vadd.f32 %v1103_v9, %v368_v8  ;;  %v485_v26 = vmax.f32 %v421_v7, 0.0  ;;  %v423_v27 = vadd.f32 %v1103_v9, %v352_v10  ;;  %v1156_v28 = vadd.f32 %v1103_v9, %v369_v13 }
  0x25   : > { %v1159_v29 = vadd.f32 %v1103_v9, %v353_v14  ;;  %v1162_v30 = vadd.f32 %v1103_v9, %v370_v15  ;;  %v1165_v31 = vadd.f32 %v1103_v9, %v354_v16  ;;  %v1168_v32 = vadd.f32 %v1103_v9, %v371_v17  ;;  %v991_v16 = vld [vmem:[%s1089_s19 + $0xd0] sm:$0xff]  }
  0x26   : > { %579 = vxpose.xlu1.b32.cont [4/16] %v499_v48, 128  ;;  %v356_v33 = vmul.f32 %v861_v18, %v1094_v0  ;;  %v1172_v34 = vadd.f32 %v1103_v9, %v355_v19  ;;  %v1175_v35 = vadd.f32 %v1103_v9, %v372_v20  ;;  %v896_v36 = vunpack.c.l.bf16 %v1152_v25 }
  0x27   : > { %547 = vxpose.xlu0.b32.cont [4/16] %v483_v49, 128  ;;  %v502_v37 = vmax.f32 %v438_v22, 0.0  ;;  %v486_v38 = vmax.f32 %v422_v23, 0.0  ;;  %v503_v40 = vmax.f32 %v439_v24, 0.0  ;;  %v487_v41 = vmax.f32 %v423_v27, 0.0 }
  0x28   : > { %v504_v42 = vmax.f32 %v1156_v28, 0.0  ;;  %v488_v43 = vmax.f32 %v1159_v29, 0.0  ;;  %v505_v46 = vmax.f32 %v1162_v30, 0.0  ;;  %v489_v47 = vmax.f32 %v1165_v31, 0.0 }
  0x29   : > { %v506_v48 = vmax.f32 %v1168_v32, 0.0  ;;  %v1189_v49 = vadd.f32 %v1103_v9, %v356_v33  ;;  %v490_v52 = vmax.f32 %v1172_v34, 0.0  ;;  %v507_v53 = vmax.f32 %v1175_v35, 0.0  ;;  %v992_v33 = vld [vmem:[%s1089_s19 + $0xd8] sm:$0xff]  }
  0x2a   : > { %580 = vxpose.xlu1.b32.cont [5/16] %v500_v11, 128  ;;  %v373_v54 = vmul.f32 %v896_v36, %v1094_v0  ;;  %v936_v55 = vunpack.c.l.bf16 %v989_v39  ;;  %v864_v58 = vunpack.c.l.bf16 %v971_v44  ;;  %v897_v59 = vunpack.c.h.bf16 %v1152_v25  ;;  %v983_v25 = vld [vmem:[%s1089_s19 + $0x90] sm:$0xff]   ;;  %v984_v36 = vld [vmem:[%s1089_s19 + $0x98] sm:$0xff]  }
  0x2b   : > { %548 = vxpose.xlu0.b32.cont [5/16] %v484_v12, 128  ;;  %v865_v60 = vunpack.c.h.bf16 %v971_v44  ;;  %v900_v61 = vunpack.c.l.bf16 %v1183_v45  ;;  %v868_v62 = vunpack.c.l.bf16 %v1192_v50  ;;  %v937_v63 = vunpack.c.h.bf16 %v989_v39 }
  0x2c   : > { %v393_v1 = vmul.f32 %v936_v55, %v1094_v0  ;;  %v904_v2 = vunpack.c.l.bf16 %v981_v51  ;;  %v905_v3 = vunpack.c.h.bf16 %v981_v51  ;;  %v940_v4 = vunpack.c.l.bf16 %v990_v56 }
  0x2d   : > { %v908_v5 = vunpack.c.l.bf16 %v982_v57  ;;  %v941_v6 = vunpack.c.h.bf16 %v990_v56  ;;  %v394_v10 = vmul.f32 %v937_v63, %v1094_v0  ;;  %v909_v11 = vunpack.c.h.bf16 %v982_v57  ;;  %v993_v63 = vld [vmem:[%s1089_s19 + $0xe0] sm:$0xff]  }
  0x2e   : > { %581 = vxpose.xlu1.b32.cont [6/16] %v501_v21, 128  ;;  %v1205_v7 = vadd.f32 %v1103_v9, %v393_v1  ;;  %v377_v8 = vmul.f32 %v904_v2, %v1094_v0  ;;  %v378_v12 = vmul.f32 %v905_v3, %v1094_v0  ;;  %v395_v13 = vmul.f32 %v940_v4, %v1094_v0 }
  0x2f   : > { %549 = vxpose.xlu0.b32.cont [6/16] %v485_v26, 128  ;;  %v379_v14 = vmul.f32 %v908_v5, %v1094_v0  ;;  %v396_v15 = vmul.f32 %v941_v6, %v1094_v0  ;;  %v901_v17 = vunpack.c.h.bf16 %v1183_v45  ;;  %v1219_v19 = vadd.f32 %v1103_v9, %v394_v10 }
  0x30   : > { %v1216_v18 = vadd.f32 %v1103_v9, %v377_v8  ;;  %v380_v20 = vmul.f32 %v909_v11, %v1094_v0  ;;  %v1223_v21 = vadd.f32 %v1103_v9, %v378_v12  ;;  %v1226_v22 = vadd.f32 %v1103_v9, %v395_v13  ;;  %v994_v11 = vld [vmem:[%s1089_s19 + $0xe8] sm:$0xff]  }
  0x31   : > { %v1229_v23 = vadd.f32 %v1103_v9, %v379_v14  ;;  %v1232_v24 = vadd.f32 %v1103_v9, %v396_v15  ;;  %v1236_v26 = vadd.f32 %v1103_v9, %v373_v54  ;;  %v357_v27 = vmul.f32 %v864_v58, %v1094_v0  ;;  %v986_v12 = vld [vmem:[%s1089_s19 + $0xa8] sm:$0xff]  }
  0x32   : > { %582 = vxpose.xlu1.b32.cont [7/16] %v502_v37, 128  ;;  %v1240_v28 = vadd.f32 %v1103_v9, %v380_v20  ;;  %v944_v29 = vunpack.c.l.bf16 %v991_v16  ;;  %v374_v37 = vmul.f32 %v897_v59, %v1094_v0  ;;  %v375_v39 = vmul.f32 %v900_v61, %v1094_v0 }
  0x33   : > { %550 = vxpose.xlu0.b32.cont [7/16] %v486_v38, 128  ;;  %v358_v38 = vmul.f32 %v865_v60, %v1094_v0  ;;  %v912_v45 = vunpack.c.l.bf16 %v983_v25  ;;  %v945_v51 = vunpack.c.h.bf16 %v991_v16  ;;  %v913_v54 = vunpack.c.h.bf16 %v983_v25 }
  0x34   : > { %v397_v44 = vmul.f32 %v944_v29, %v1094_v0  ;;  %v948_v55 = vunpack.c.l.bf16 %v992_v33  ;;  %v916_v56 = vunpack.c.l.bf16 %v984_v36  ;;  %v949_v57 = vunpack.c.h.bf16 %v992_v33 }
  0x35   : > { %v381_v59 = vmul.f32 %v912_v45, %v1094_v0  ;;  %v491_v1 = vmax.f32 %v1189_v49, 0.0  ;;  %v508_v49 = vmax.f32 %v1236_v26, 0.0  ;;  %v376_v6 = vmul.f32 %v901_v17, %v1094_v0 }
  0x36   : > { %583 = vxpose.xlu1.b32.cont [8/16] %v503_v40, 128  ;;  %v869_v40 = vunpack.c.h.bf16 %v1192_v50  ;;  %v1253_v58 = vadd.f32 %v1103_v9, %v397_v44  ;;  %v382_v50 = vmul.f32 %v913_v54, %v1094_v0  ;;  %v399_v60 = vmul.f32 %v948_v55, %v1094_v0  ;;  %v995_v44 = vld [vmem:[%s1089_s19 + $0xf0] sm:$0xff]  }
  0x37   : > { %551 = vxpose.xlu0.b32.cont [8/16] %v487_v41, 128  ;;  %v1249_v41 = vmul.f32 %v868_v62, %v1094_v0  ;;  %v383_v61 = vmul.f32 %v916_v56, %v1094_v0  ;;  %v400_v62 = vmul.f32 %v949_v57, %v1094_v0  ;;  %v1268_v2 = vadd.f32 %v1103_v9, %v381_v59  ;;  %v987_v59 = vld [vmem:[%s1089_s19 + $0xb0] sm:$0xff]  }
  0x38   : > { %v1275_v5 = vadd.f32 %v1103_v9, %v382_v50  ;;  %v1278_v30 = vadd.f32 %v1103_v9, %v399_v60  ;;  %v952_v10 = vunpack.c.l.bf16 %v993_v63  ;;  %v428_v13 = vadd.f32 %v1103_v9, %v357_v27  ;;  %v996_v60 = vld [vmem:[%s1089_s19 + $0xf8] sm:$0xff]  }
  0x39   : > { %v1281_v31 = vadd.f32 %v1103_v9, %v383_v61  ;;  %v445_v14 = vadd.f32 %v1103_v9, %v374_v37  ;;  %v429_v15 = vadd.f32 %v1103_v9, %v358_v38  ;;  %v360_v16 = vmul.f32 %v869_v40, %v1094_v0  ;;  %v988_v61 = vld [vmem:[%s1089_s19 + $0xb8] sm:$0xff]  }
  0x3a   : > { %584 = vxpose.xlu1.b32.cont [9/16] %v504_v42, 128  ;;  %v398_v42 = vmul.f32 %v945_v51, %v1094_v0  ;;  %v1303_v17 = vadd.f32 %v1103_v9, %v375_v39  ;;  %v401_v20 = vmul.f32 %v952_v10, %v1094_v0  ;;  %v953_v26 = vunpack.c.h.bf16 %v993_v63 }
  0x3b   : > { %552 = vxpose.xlu0.b32.cont [9/16] %v488_v43, 128  ;;  %v917_v43 = vunpack.c.h.bf16 %v984_v36  ;;  %v956_v29 = vunpack.c.l.bf16 %v994_v11  ;;  %v924_v33 = vunpack.c.l.bf16 %v986_v12  ;;  %v957_v36 = vunpack.c.h.bf16 %v994_v11 }
  0x3c   : > { %v1271_v3 = vadd.f32 %v1103_v9, %v398_v42  ;;  %v1307_v37 = vadd.f32 %v1103_v9, %v401_v20  ;;  %v402_v34 = vmul.f32 %v953_v26, %v1094_v0  ;;  %v492_v45 = vmax.f32 %v428_v13, 0.0 }
  0x3d   : > { %v384_v4 = vmul.f32 %v917_v43, %v1094_v0  ;;  %v403_v38 = vmul.f32 %v956_v29, %v1094_v0  ;;  %v387_v39 = vmul.f32 %v924_v33, %v1094_v0  ;;  %v404_v40 = vmul.f32 %v957_v36, %v1094_v0 }
  0x3e   : > { %585 = vxpose.xlu1.b32.cont [10/16] %v505_v46, 128  ;;  %v1284_v46 = vadd.f32 %v1103_v9, %v400_v62  ;;  %v1322_v54 = vadd.f32 %v1103_v9, %v402_v34  ;;  %v430_v42 = vadd.f32 %v1103_v9, %v1249_v41  ;;  %v960_v50 = vunpack.c.l.bf16 %v995_v44 }
  0x3f   : > { %553 = vxpose.xlu0.b32.cont [10/16] %v489_v47, 128  ;;  %v985_v47 = vld [vmem:[%s1089_s19 + $0xa0] sm:$0xff]   ;;  %v1290_v8 = vadd.f32 %v1103_v9, %v384_v4  ;;  %v1329_v57 = vadd.f32 %v1103_v9, %v403_v38  ;;  %v1332_v35 = vadd.f32 %v1103_v9, %v387_v39  ;;  %v509_v62 = vmax.f32 %v445_v14, 0.0 }
  0x40   : > { %v920_v25 = vunpack.c.l.bf16 %v985_v47  ;;  %v921_v27 = vunpack.c.h.bf16 %v985_v47  ;;  %v493_v63 = vmax.f32 %v429_v15, 0.0  ;;  %v431_v4 = vadd.f32 %v1103_v9, %v360_v16 }
  0x41   : > { %v510_v47 = vmax.f32 %v1303_v17, 0.0  ;;  %v405_v10 = vmul.f32 %v960_v50, %v1094_v0  ;;  %v928_v11 = vunpack.c.l.bf16 %v987_v59  ;;  %v961_v41 = vunpack.c.h.bf16 %v995_v44 }
  0x42   : > { %586 = vxpose.xlu1.b32.cont [11/16] %v506_v48, 128  ;;  %v385_v32 = vmul.f32 %v920_v25, %v1094_v0  ;;  %v925_v48 = vunpack.c.h.bf16 %v986_v12  ;;  %v929_v12 = vunpack.c.h.bf16 %v987_v59  ;;  %v964_v13 = vunpack.c.l.bf16 %v996_v60 }
  0x43   : > { %554 = vxpose.xlu0.b32.cont [11/16] %v490_v52, 128  ;;  %v386_v52 = vmul.f32 %v921_v27, %v1094_v0  ;;  %v932_v20 = vunpack.c.l.bf16 %v988_v61  ;;  %v965_v25 = vunpack.c.h.bf16 %v996_v60  ;;  %v1350_v26 = vadd.f32 %v1103_v9, %v405_v10 }
  0x44   : > { %v1319_v51 = vadd.f32 %v1103_v9, %v385_v32  ;;  %v388_v55 = vmul.f32 %v925_v48, %v1094_v0  ;;  %v389_v14 = vmul.f32 %v928_v11, %v1094_v0  ;;  %v933_v15 = vunpack.c.h.bf16 %v988_v61 }
  0x45   : > { %v1326_v56 = vadd.f32 %v1103_v9, %v386_v52  ;;  %v407_v16 = vmul.f32 %v964_v13, %v1094_v0  ;;  %v391_v17 = vmul.f32 %v932_v20, %v1094_v0  ;;  %v408_v27 = vmul.f32 %v965_v25, %v1094_v0 }
  0x46   : > { %587 = vxpose.xlu1.b32.cont [12/16] %v507_v53, 128  ;;  %v1335_v53 = vadd.f32 %v1103_v9, %v404_v40  ;;  %v1341_v43 = vadd.f32 %v1103_v9, %v388_v55  ;;  %v494_v29 = vmax.f32 %v430_v42, 0.0  ;;  %v1359_v33 = vadd.f32 %v1103_v9, %v389_v14 }
  0x47   : > { %555 = vxpose.xlu0.b32.cont [12/16] %v491_v1, 128  ;;  %v447_v1 = vadd.f32 %v1103_v9, %v376_v6  ;;  %v406_v6 = vmul.f32 %v961_v41, %v1094_v0  ;;  %v392_v32 = vmul.f32 %v933_v15, %v1094_v0  ;;  %v1369_v48 = vadd.f32 %v1103_v9, %v407_v16 }
  0x48   : > { %v1372_v52 = vadd.f32 %v1103_v9, %v391_v17  ;;  %v1375_v38 = vadd.f32 %v1103_v9, %v408_v27  ;;  %v495_v44 = vmax.f32 %v431_v4, 0.0  ;;  %v529_v55 = vmax.f32 %v1219_v19, 0.0 }
  0x49   : > { %v1362_v36 = vadd.f32 %v1103_v9, %v406_v6  ;;  %v1378_v39 = vadd.f32 %v1103_v9, %v392_v32  ;;  %v511_v40 = vmax.f32 %v447_v1, 0.0  ;;  %v513_v59 = vmax.f32 %v1223_v21, 0.0 }
  0x4a   : > { %588 = vxpose.xlu1.b32.cont [13/16] %v508_v49, 128  ;;  %v390_v49 = vmul.f32 %v929_v12, %v1094_v0  ;;  %v528_v0 = vmax.f32 %v1205_v7, 0.0  ;;  %v514_v42 = vmax.f32 %v1229_v23, 0.0  ;;  %v531_v50 = vmax.f32 %v1232_v24, 0.0 }
  0x4b   : > { %556 = vxpose.xlu0.b32.cont [13/16] %v492_v45, 128  ;;  %v512_v45 = vmax.f32 %v1216_v18, 0.0  ;;  %v515_v7 = vmax.f32 %v1240_v28, 0.0  ;;  %v532_v18 = vmax.f32 %v1253_v58, 0.0  ;;  %v516_v19 = vmax.f32 %v1268_v2, 0.0 }
  0x4c   : > { %v1366_v34 = vadd.f32 %v1103_v9, %v390_v49  ;;  %v530_v9 = vmax.f32 %v1226_v22, 0.0  ;;  %v533_v21 = vmax.f32 %v1271_v3, 0.0  ;;  %v517_v22 = vmax.f32 %v1275_v5, 0.0 }
  0x4d   : > { %v534_v23 = vmax.f32 %v1278_v30, 0.0  ;;  %v518_v24 = vmax.f32 %v1281_v31, 0.0  ;;  %v535_v28 = vmax.f32 %v1284_v46, 0.0  ;;  %v519_v58 = vmax.f32 %v1290_v8, 0.0 }
  0x4e   : > { %589 = vxpose.xlu1.b32.cont [14/16] %v509_v62, 128  ;;  %v536_v2 = vmax.f32 %v1307_v37, 0.0  ;;  %v520_v3 = vmax.f32 %v1319_v51, 0.0  ;;  %v537_v5 = vmax.f32 %v1322_v54, 0.0  ;;  %v521_v30 = vmax.f32 %v1326_v56, 0.0 }
  0x4f   : > { %557 = vxpose.xlu0.b32.cont [14/16] %v493_v63, 128  ;;  %v538_v31 = vmax.f32 %v1329_v57, 0.0  ;;  %v522_v46 = vmax.f32 %v1332_v35, 0.0  ;;  %v539_v8 = vmax.f32 %v1335_v53, 0.0  ;;  %v523_v37 = vmax.f32 %v1341_v43, 0.0 }
  0x50   : > { %v540_v51 = vmax.f32 %v1350_v26, 0.0  ;;  %v524_v54 = vmax.f32 %v1359_v33, 0.0  ;;  %v541_v56 = vmax.f32 %v1362_v36, 0.0  ;;  %v525_v57 = vmax.f32 %v1366_v34, 0.0 }
  0x51   : > { %v542_v35 = vmax.f32 %v1369_v48, 0.0  ;;  %v526_v53 = vmax.f32 %v1372_v52, 0.0  ;;  %v543_v43 = vmax.f32 %v1375_v38, 0.0  ;;  %v527_v60 = vmax.f32 %v1378_v39, 0.0 }
  0x52   : > { %590 = vxpose.xlu1.b32.cont [15/16] %v510_v47, 128 }
  0x53   : > { %558 = vxpose.xlu0.b32.cont [15/16] %v494_v29, 128 }
  0x56   : > { %591 = vxpose.xlu1.b32.end [16/16] %v511_v40, 128 }
  0x57   : > { %559 = vxpose.xlu0.b32.end [16/16] %v495_v44, 128 }
  0x5a   : > { %640 = vxpose.xlu1.b32.start [1/16] %v528_v0, 128 }
  0x5b   : > { %608 = vxpose.xlu0.b32.start [1/16] %v512_v45, 128 }
  0x5e   : > { %641 = vxpose.xlu1.b32.cont [2/16] %v529_v55, 128 }
  0x5f   : > { %609 = vxpose.xlu0.b32.cont [2/16] %v513_v59, 128 }
  0x62   : > { %642 = vxpose.xlu1.b32.cont [3/16] %v530_v9, 128 }
  0x63   : > { %610 = vxpose.xlu0.b32.cont [3/16] %v514_v42, 128 }
  0x66   : > { %643 = vxpose.xlu1.b32.cont [4/16] %v531_v50, 128 }
  0x67   : > { %611 = vxpose.xlu0.b32.cont [4/16] %v515_v7, 128 }
  0x6a   : > { %644 = vxpose.xlu1.b32.cont [5/16] %v532_v18, 128 }
  0x6b   : > { %612 = vxpose.xlu0.b32.cont [5/16] %v516_v19, 128 }
  0x6e   : > { %645 = vxpose.xlu1.b32.cont [6/16] %v533_v21, 128 }
  0x6f   : > { %613 = vxpose.xlu0.b32.cont [6/16] %v517_v22, 128 }
  0x72   : > { %646 = vxpose.xlu1.b32.cont [7/16] %v534_v23, 128 }
  0x73   : > { %614 = vxpose.xlu0.b32.cont [7/16] %v518_v24, 128 }
  0x76   : > { %647 = vxpose.xlu1.b32.cont [8/16] %v535_v28, 128 }
  0x77   : > { %615 = vxpose.xlu0.b32.cont [8/16] %v519_v58, 128 }
  0x7a   : > { %648 = vxpose.xlu1.b32.cont [9/16] %v536_v2, 128 }
  0x7b   : > { %616 = vxpose.xlu0.b32.cont [9/16] %v520_v3, 128 }
  0x7e   : > { %649 = vxpose.xlu1.b32.cont [10/16] %v537_v5, 128 }
  0x7f   : > { %617 = vxpose.xlu0.b32.cont [10/16] %v521_v30, 128 }
  0x82   : > { %650 = vxpose.xlu1.b32.cont [11/16] %v538_v31, 128 }
  0x83   : > { %618 = vxpose.xlu0.b32.cont [11/16] %v522_v46, 128 }
  0x86   : > { %651 = vxpose.xlu1.b32.cont [12/16] %v539_v8, 128 }
  0x87   : > { %619 = vxpose.xlu0.b32.cont [12/16] %v523_v37, 128 }
  0x8a   : > { %652 = vxpose.xlu1.b32.cont [13/16] %v540_v51, 128 }
  0x8b   : > { %620 = vxpose.xlu0.b32.cont [13/16] %v524_v54, 128 }
  0x8e   : > { %653 = vxpose.xlu1.b32.cont [14/16] %v541_v56, 128 }
  0x8f   : > { %621 = vxpose.xlu0.b32.cont [14/16] %v525_v57, 128 }
  0x92   : > { %654 = vxpose.xlu1.b32.cont [15/16] %v542_v35, 128 }
  0x93   : > { %622 = vxpose.xlu0.b32.cont [15/16] %v526_v53, 128 }
  0x96   : > { %655 = vxpose.xlu1.b32.end [16/16] %v543_v43, 128 }
  0x97   : > { %623 = vxpose.xlu0.b32.end [16/16] %v527_v60, 128 }
  0x9a   : > { %v592_v61 = vpop.trf.xlu1 }
  0x9b   : > { %v560_v62 = vpop.trf.xlu0  ;;  %673 = vst [vmem:[%s1416_s27 + $0x8] sm:$0xff] %v592_v61 }
  0x9c   : > { %672 = vst [vmem:[%s1416_s27] sm:$0xff] %v560_v62 }
  0x9e   : > { %v593_v63 = vpop.trf.xlu1 }
  0x9f   : > { %v561_v1 = vpop.trf.xlu0  ;;  %677 = vst [vmem:[%s1416_s27 + $0x28] sm:$0xff] %v593_v63 }
  0xa0   : > { %676 = vst [vmem:[%s1416_s27 + $0x20] sm:$0xff] %v561_v1 }
  0xa2   : > { %v594_v4 = vpop.trf.xlu1 }
  0xa3   : > { %v562_v47 = vpop.trf.xlu0  ;;  %681 = vst [vmem:[%s1416_s27 + $0x48] sm:$0xff] %v594_v4 }
  0xa4   : > { %680 = vst [vmem:[%s1416_s27 + $0x40] sm:$0xff] %v562_v47 }
  0xa6   : > { %v595_v10 = vpop.trf.xlu1 }
  0xa7   : > { %v563_v11 = vpop.trf.xlu0  ;;  %685 = vst [vmem:[%s1416_s27 + $0x68] sm:$0xff] %v595_v10 }
  0xa8   : > { %684 = vst [vmem:[%s1416_s27 + $0x60] sm:$0xff] %v563_v11 }
  0xaa   : > { %v596_v41 = vpop.trf.xlu1 }
  0xab   : > { %v564_v12 = vpop.trf.xlu0  ;;  %689 = vst [vmem:[%s1416_s27 + $0x88] sm:$0xff] %v596_v41 }
  0xac   : > { %688 = vst [vmem:[%s1416_s27 + $0x80] sm:$0xff] %v564_v12 }
  0xae   : > { %v597_v13 = vpop.trf.xlu1 }
  0xaf   : > { %v565_v20 = vpop.trf.xlu0  ;;  %693 = vst [vmem:[%s1416_s27 + $0xa8] sm:$0xff] %v597_v13 }
  0xb0   : > { %692 = vst [vmem:[%s1416_s27 + $0xa0] sm:$0xff] %v565_v20 }
  0xb2   : > { %v598_v25 = vpop.trf.xlu1 }
  0xb3   : > { %v566_v26 = vpop.trf.xlu0  ;;  %697 = vst [vmem:[%s1416_s27 + $0xc8] sm:$0xff] %v598_v25 }
  0xb4   : > { %696 = vst [vmem:[%s1416_s27 + $0xc0] sm:$0xff] %v566_v26 }
  0xb6   : > { %v599_v14 = vpop.trf.xlu1 }
  0xb7   : > { %v567_v6 = vpop.trf.xlu0  ;;  %701 = vst [vmem:[%s1416_s27 + $0xe8] sm:$0xff] %v599_v14 }
  0xb8   : > { %700 = vst [vmem:[%s1416_s27 + $0xe0] sm:$0xff] %v567_v6 }
  0xba   : > { %v600_v15 = vpop.trf.xlu1 }
  0xbb   : > { %v568_v49 = vpop.trf.xlu0  ;;  %705 = vst [vmem:[%s1416_s27 + $0x108] sm:$0xff] %v600_v15 }
  0xbc   : > { %704 = vst [vmem:[%s1416_s27 + $0x100] sm:$0xff] %v568_v49 }
  0xbe   : > { %v601_v16 = vpop.trf.xlu1 }
  0xbf   : > { %v569_v17 = vpop.trf.xlu0  ;;  %709 = vst [vmem:[%s1416_s27 + $0x128] sm:$0xff] %v601_v16 }
  0xc0   : > { %708 = vst [vmem:[%s1416_s27 + $0x120] sm:$0xff] %v569_v17 }
  0xc2   : > { %v602_v27 = vpop.trf.xlu1 }
  0xc3   : > { %v570_v29 = vpop.trf.xlu0  ;;  %713 = vst [vmem:[%s1416_s27 + $0x148] sm:$0xff] %v602_v27 }
  0xc4   : > { %712 = vst [vmem:[%s1416_s27 + $0x140] sm:$0xff] %v570_v29 }
  0xc6   : > { %v603_v33 = vpop.trf.xlu1 }
  0xc7   : > { %v571_v36 = vpop.trf.xlu0  ;;  %717 = vst [vmem:[%s1416_s27 + $0x168] sm:$0xff] %v603_v33 }
  0xc8   : > { %716 = vst [vmem:[%s1416_s27 + $0x160] sm:$0xff] %v571_v36 }
  0xca   : > { %v604_v32 = vpop.trf.xlu1 }
  0xcb   : > { %v572_v34 = vpop.trf.xlu0  ;;  %721 = vst [vmem:[%s1416_s27 + $0x188] sm:$0xff] %v604_v32 }
  0xcc   : > { %720 = vst [vmem:[%s1416_s27 + $0x180] sm:$0xff] %v572_v34 }
  0xce   : > { %v605_v48 = vpop.trf.xlu1 }
  0xcf   : > { %v573_v52 = vpop.trf.xlu0  ;;  %725 = vst [vmem:[%s1416_s27 + $0x1a8] sm:$0xff] %v605_v48 }
  0xd0   : > { %724 = vst [vmem:[%s1416_s27 + $0x1a0] sm:$0xff] %v573_v52 }
  0xd2   : > { %v606_v38 = vpop.trf.xlu1 }
  0xd3   : > { %v574_v39 = vpop.trf.xlu0  ;;  %729 = vst [vmem:[%s1416_s27 + $0x1c8] sm:$0xff] %v606_v38 }
  0xd4   : > { %728 = vst [vmem:[%s1416_s27 + $0x1c0] sm:$0xff] %v574_v39 }
  0xd6   : > { %v607_v40 = vpop.trf.xlu1 }
  0xd7   : > { %v575_v44 = vpop.trf.xlu0  ;;  %733 = vst [vmem:[%s1416_s27 + $0x1e8] sm:$0xff] %v607_v40 }
  0xd8   : > { %732 = vst [vmem:[%s1416_s27 + $0x1e0] sm:$0xff] %v575_v44 }
  0xda   : > { %v656_v0 = vpop.trf.xlu1 }
  0xdb   : > { %v624_v45 = vpop.trf.xlu0  ;;  %675 = vst [vmem:[%s1416_s27 + $0x18] sm:$0xff] %v656_v0 }
  0xdc   : > { %674 = vst [vmem:[%s1416_s27 + $0x10] sm:$0xff] %v624_v45 }
  0xde   : > { %v657_v55 = vpop.trf.xlu1 }
  0xdf   : > { %v625_v59 = vpop.trf.xlu0  ;;  %679 = vst [vmem:[%s1416_s27 + $0x38] sm:$0xff] %v657_v55 }
  0xe0   : > { %678 = vst [vmem:[%s1416_s27 + $0x30] sm:$0xff] %v625_v59 }
  0xe2   : > { %v658_v9 = vpop.trf.xlu1 }
  0xe3   : > { %v626_v42 = vpop.trf.xlu0  ;;  %683 = vst [vmem:[%s1416_s27 + $0x58] sm:$0xff] %v658_v9 }
  0xe4   : > { %682 = vst [vmem:[%s1416_s27 + $0x50] sm:$0xff] %v626_v42 }
  0xe6   : > { %v659_v50 = vpop.trf.xlu1 }
  0xe7   : > { %v627_v7 = vpop.trf.xlu0  ;;  %687 = vst [vmem:[%s1416_s27 + $0x78] sm:$0xff] %v659_v50 }
  0xe8   : > { %686 = vst [vmem:[%s1416_s27 + $0x70] sm:$0xff] %v627_v7 }
  0xea   : > { %v660_v18 = vpop.trf.xlu1 }
  0xeb   : > { %v628_v19 = vpop.trf.xlu0  ;;  %691 = vst [vmem:[%s1416_s27 + $0x98] sm:$0xff] %v660_v18 }
  0xec   : > { %690 = vst [vmem:[%s1416_s27 + $0x90] sm:$0xff] %v628_v19 }
  0xee   : > { %v661_v21 = vpop.trf.xlu1 }
  0xef   : > { %v629_v22 = vpop.trf.xlu0  ;;  %695 = vst [vmem:[%s1416_s27 + $0xb8] sm:$0xff] %v661_v21 }
  0xf0   : > { %694 = vst [vmem:[%s1416_s27 + $0xb0] sm:$0xff] %v629_v22 }
  0xf2   : > { %v662_v23 = vpop.trf.xlu1 }
  0xf3   : > { %v630_v24 = vpop.trf.xlu0  ;;  %699 = vst [vmem:[%s1416_s27 + $0xd8] sm:$0xff] %v662_v23 }
  0xf4   : > { %698 = vst [vmem:[%s1416_s27 + $0xd0] sm:$0xff] %v630_v24 }
  0xf6   : > { %v663_v28 = vpop.trf.xlu1 }
  0xf7   : > { %v631_v58 = vpop.trf.xlu0  ;;  %703 = vst [vmem:[%s1416_s27 + $0xf8] sm:$0xff] %v663_v28 }
  0xf8   : > { %702 = vst [vmem:[%s1416_s27 + $0xf0] sm:$0xff] %v631_v58 }
  0xfa   : > { %v664_v2 = vpop.trf.xlu1 }
  0xfb   : > { %v632_v3 = vpop.trf.xlu0  ;;  %707 = vst [vmem:[%s1416_s27 + $0x118] sm:$0xff] %v664_v2 }
  0xfc   : > { %706 = vst [vmem:[%s1416_s27 + $0x110] sm:$0xff] %v632_v3 }
  0xfe   : > { %v665_v5 = vpop.trf.xlu1 }
  0xff   : > { %v633_v30 = vpop.trf.xlu0  ;;  %711 = vst [vmem:[%s1416_s27 + $0x138] sm:$0xff] %v665_v5 }
 0x100   : > { %710 = vst [vmem:[%s1416_s27 + $0x130] sm:$0xff] %v633_v30 }
 0x102   : > { %v666_v31 = vpop.trf.xlu1 }
 0x103   : > { %v634_v46 = vpop.trf.xlu0  ;;  %715 = vst [vmem:[%s1416_s27 + $0x158] sm:$0xff] %v666_v31 }
 0x104   : > { %714 = vst [vmem:[%s1416_s27 + $0x150] sm:$0xff] %v634_v46 }
 0x106   : > { %v667_v8 = vpop.trf.xlu1 }
 0x107   : > { %v635_v37 = vpop.trf.xlu0  ;;  %719 = vst [vmem:[%s1416_s27 + $0x178] sm:$0xff] %v667_v8 }
 0x108   : > { %718 = vst [vmem:[%s1416_s27 + $0x170] sm:$0xff] %v635_v37 }
 0x10a   : > { %v668_v51 = vpop.trf.xlu1 }
 0x10b   : > { %v636_v54 = vpop.trf.xlu0  ;;  %723 = vst [vmem:[%s1416_s27 + $0x198] sm:$0xff] %v668_v51 }
 0x10c   : > { %722 = vst [vmem:[%s1416_s27 + $0x190] sm:$0xff] %v636_v54 }
 0x10e   : > { %v669_v56 = vpop.trf.xlu1 }
 0x10f   : > { %v637_v57 = vpop.trf.xlu0  ;;  %727 = vst [vmem:[%s1416_s27 + $0x1b8] sm:$0xff] %v669_v56 }
 0x110   : > { %726 = vst [vmem:[%s1416_s27 + $0x1b0] sm:$0xff] %v637_v57 }
 0x112   : > { %v670_v35 = vpop.trf.xlu1 }
 0x113   : > { %v638_v53 = vpop.trf.xlu0  ;;  %731 = vst [vmem:[%s1416_s27 + $0x1d8] sm:$0xff] %v670_v35 }
 0x114   : > { %730 = vst [vmem:[%s1416_s27 + $0x1d0] sm:$0xff] %v638_v53 }
 0x116   : > { %v671_v43 = vpop.trf.xlu1 }
 0x117   : > { %v639_v60 = vpop.trf.xlu0  ;;  %735 = vst [vmem:[%s1416_s27 + $0x1f8] sm:$0xff] %v671_v43 }
 0x118   : > { %734 = vst [vmem:[%s1416_s27 + $0x1f0] sm:$0xff] %v639_v60 }
 0x119 PF: > { %s13_s14 = sadd.s32 1, %s1043_s14   ;;  %s1495_s12 = smov %s1039_s13 }
 0x11a   : > { %p10_p5 = scmp.ge.s32.totalorder %s13_s14, 4   ;;  %s1496_s13 = smov %s1498_s15 }
 0x11c   :  { %12 = sbr.rel (!%p10_p5) target bundleno = 2 (0x2), region = 62 }

// kernel: conv_module_forward.2
= control target key start
LH: loop header
LB: loop body
LE: loop exit
PB: predicated region body
PF: predicated region fallthrough
CT: control target
= control target key end

     0   :  { %s2051_s15 = smov 0   ;;  %s2370_s0 = inlined_call_operand.vmem [shape: bf16[1024,128], index: 0, kind: input, shape index: {}]   ;;  %s2371_s1 = inlined_call_operand.vmem [shape: bf16[128,128], index: 1, kind: input, shape index: {}]   ;;  %s2372_s2 = inlined_call_operand.vmem [shape: bf16[1024,128], index: 2, kind: output, shape index: {0}]   ;;  %s2373_s3 = inlined_call_operand.vmem [shape: f32[2,8,128], index: 3, kind: output, shape index: {1}]   ;;  %s2374_s4 = inlined_call_operand.vmem [shape: f32[2,8,128], index: 4, kind: output, shape index: {2}]  }
   0x1 LB: > { %s2057_s16 = sadd.s32 4294967295, %s2024_s15   ;;  %p1466_p0 = scmp.ge.s32.totalorder %s2024_s15, 1  ;;  %s2024_s15 = sphi %s2051_s15, %s15_s15  }
   0x2   : > { %p168_p1 = scmp.lt.s32.totalorder %s2024_s15, 3 }
   0x4   : > { %p169_p2 = pnand %p1466_p0, %p168_p1 }
   0x5   : > { %v1978_v0 = vld [vmem:[%s2371_s1] sm:$0xff] (!%p169_p2)   ;;  %s1467_s19 = sshll.u32 (!%p169_p2), %s2057_s16, 6  ;;  %v1979_v1 = vld [vmem:[%s2371_s1 + $0x8] sm:$0xff] (!%p169_p2)   ;;  %v1980_v2 = vld [vmem:[%s2371_s1 + $0x10] sm:$0xff] (!%p169_p2)   ;;  %p214_p4 = scmp.lt.s32.totalorder (!%p169_p2), %s2057_s16, 1 }
   0x6   : > { %172 = sbr.rel (%p169_p2) target bundleno = 382 (0x17e), region = 28  ;;  %p203_p3 = scmp.lt.s32.totalorder (!%p169_p2), %s1467_s19, 127  ;;  %1874 = vmatprep.subr.bf16.mxu0 (!%p169_p2), %v1978_v0  ;;  %1954 = vmatprep.subr.bf16.mxu1 (!%p169_p2), %v1978_v0  ;;  %v1981_v3 = vld [vmem:[%s2371_s1 + $0x18] sm:$0xff] (!%p169_p2)   ;;  %v1982_v5 = vld [vmem:[%s2371_s1 + $0x20] sm:$0xff] (!%p169_p2)   ;;  %v1983_v6 = vld [vmem:[%s2371_s1 + $0x28] sm:$0xff] (!%p169_p2)  }
   0x7   : > { %1875 = vmatpush3.bf16.msra.mxu0 (!%p169_p2), %v1978_v0  ;;  %1962 = vmatpush3.bf16.msra.mxu1 (!%p169_p2), %v1978_v0  ;;  %v1984_v7 = vld [vmem:[%s2371_s1 + $0x30] sm:$0xff] (!%p169_p2)   ;;  %v1985_v8 = vld [vmem:[%s2371_s1 + $0x38] sm:$0xff] (!%p169_p2)  }
   0x8   : > { %1876 = vmatprep.subr.bf16.mxu0 (!%p169_p2), %v1979_v1  ;;  %1955 = vmatprep.subr.bf16.mxu1 (!%p169_p2), %v1979_v1 }
   0xb   : > { %1877 = vmatpush3.bf16.msra.mxu0 (!%p169_p2), %v1979_v1  ;;  %1963 = vmatpush3.bf16.msra.mxu1 (!%p169_p2), %v1979_v1 }
   0xc   : > { %1878 = vmatprep.subr.bf16.mxu0 (!%p169_p2), %v1980_v2  ;;  %1956 = vmatprep.subr.bf16.mxu1 (!%p169_p2), %v1980_v2 }
   0xd   : > { %s2376_s19 = smov (!%p203_p3, %s1467_s19), 127  ;;  %s2378_s16 = smov (!%p214_p4, %s2057_s16), 1 }
   0xe   : > { %s1468_s24 = sshll.u32 %s2376_s19, 2  ;;  %s1471_s17 = sshll.u32 %s2378_s16, 3 }
   0xf   : > { %s2079_s27 = scalar_lea.vmem %s2370_s0, %s1468_s24  ;;  %1879 = vmatpush3.bf16.msra.mxu0 %v1980_v2  ;;  %1964 = vmatpush3.bf16.msra.mxu1 %v1980_v2  ;;  %s2137_s14 = scalar_lea.vmem %s2372_s2, %s1468_s24 }
  0x10   : > { %v1986_v4 = vld [vmem:[%s2079_s27] sm:$0xff]   ;;  %1880 = vmatprep.subr.bf16.mxu0 %v1981_v3  ;;  %1957 = vmatprep.subr.bf16.mxu1 %v1981_v3  ;;  %v1987_v10 = vld [vmem:[%s2079_s27 + $0x8] sm:$0xff]   ;;  %v1988_v11 = vld [vmem:[%s2079_s27 + $0x10] sm:$0xff]   ;;  %s217_s20 = scalar_lea.vmem %s2373_s3, %s1471_s17  ;;  %s221_s22 = scalar_lea.vmem %s2374_s4, %s1471_s17 }
  0x11   : > { %1890 = vmatprep.mubr.bf16.mxu0 %v1986_v4  ;;  %v2002_v9 = vld [vmem:[%s2079_s27 + $0x80] sm:$0xff]   ;;  %v2003_v12 = vld [vmem:[%s2079_s27 + $0x88] sm:$0xff]   ;;  %v2004_v13 = vld [vmem:[%s2079_s27 + $0x90] sm:$0xff]  }
  0x12   : > { %1922 = vmatprep.mubr.bf16.mxu1 %v2002_v9  ;;  %v1989_v14 = vld [vmem:[%s2079_s27 + $0x18] sm:$0xff]   ;;  %v1990_v15 = vld [vmem:[%s2079_s27 + $0x20] sm:$0xff]   ;;  %v1991_v18 = vld [vmem:[%s2079_s27 + $0x28] sm:$0xff]  }
  0x13   : > { %1881 = vmatpush3.bf16.msra.mxu0 %v1981_v3  ;;  %1965 = vmatpush3.bf16.msra.mxu1 %v1981_v3  ;;  %v2005_v16 = vld [vmem:[%s2079_s27 + $0x98] sm:$0xff]   ;;  %v2006_v17 = vld [vmem:[%s2079_s27 + $0xa0] sm:$0xff]   ;;  %v2007_v19 = vld [vmem:[%s2079_s27 + $0xa8] sm:$0xff]  }
  0x14   : > { %1882 = vmatprep.subr.bf16.mxu0 %v1982_v5  ;;  %1958 = vmatprep.subr.bf16.mxu1 %v1982_v5  ;;  %v1992_v20 = vld [vmem:[%s2079_s27 + $0x30] sm:$0xff]   ;;  %v1993_v22 = vld [vmem:[%s2079_s27 + $0x38] sm:$0xff]   ;;  %v1994_v24 = vld [vmem:[%s2079_s27 + $0x40] sm:$0xff]  }
  0x15   : > { %v2008_v21 = vld [vmem:[%s2079_s27 + $0xb0] sm:$0xff]   ;;  %v2009_v23 = vld [vmem:[%s2079_s27 + $0xb8] sm:$0xff]   ;;  %v2010_v25 = vld [vmem:[%s2079_s27 + $0xc0] sm:$0xff]  }
  0x16   : > { %v1995_v26 = vld [vmem:[%s2079_s27 + $0x48] sm:$0xff]   ;;  %v1996_v28 = vld [vmem:[%s2079_s27 + $0x50] sm:$0xff]   ;;  %v1997_v30 = vld [vmem:[%s2079_s27 + $0x58] sm:$0xff]  }
  0x17   : > { %1883 = vmatpush3.bf16.msra.mxu0 %v1982_v5  ;;  %1966 = vmatpush3.bf16.msra.mxu1 %v1982_v5  ;;  %v2011_v27 = vld [vmem:[%s2079_s27 + $0xc8] sm:$0xff]   ;;  %v2012_v29 = vld [vmem:[%s2079_s27 + $0xd0] sm:$0xff]   ;;  %v2013_v31 = vld [vmem:[%s2079_s27 + $0xd8] sm:$0xff]  }
  0x18   : > { %1884 = vmatprep.subr.bf16.mxu0 %v1983_v6  ;;  %1959 = vmatprep.subr.bf16.mxu1 %v1983_v6  ;;  %v1998_v32 = vld [vmem:[%s2079_s27 + $0x60] sm:$0xff]   ;;  %v1999_v34 = vld [vmem:[%s2079_s27 + $0x68] sm:$0xff]   ;;  %v2000_v36 = vld [vmem:[%s2079_s27 + $0x70] sm:$0xff]  }
  0x19   : > { %v2014_v33 = vld [vmem:[%s2079_s27 + $0xe0] sm:$0xff]   ;;  %v2015_v35 = vld [vmem:[%s2079_s27 + $0xe8] sm:$0xff]   ;;  %v2016_v37 = vld [vmem:[%s2079_s27 + $0xf0] sm:$0xff]  }
  0x1a   : > { %v2001_v38 = vld [vmem:[%s2079_s27 + $0x78] sm:$0xff]  }
  0x1b   : > { %1885 = vmatpush3.bf16.msra.mxu0 %v1983_v6  ;;  %1967 = vmatpush3.bf16.msra.mxu1 %v1983_v6  ;;  %v2017_v39 = vld [vmem:[%s2079_s27 + $0xf8] sm:$0xff]  }
  0x1c   : > { %1886 = vmatprep.subr.bf16.mxu0 %v1984_v7  ;;  %1960 = vmatprep.subr.bf16.mxu1 %v1984_v7 }
  0x1f   : > { %1887 = vmatpush3.bf16.msra.mxu0 %v1984_v7  ;;  %1968 = vmatpush3.bf16.msra.mxu1 %v1984_v7 }
  0x20   : > { %1888 = vmatprep.subr.bf16.mxu0 %v1985_v8  ;;  %1961 = vmatprep.subr.bf16.mxu1 %v1985_v8 }
  0x23   : > { %1889 = vmatpush3.bf16.msra.mxu0 %v1985_v8  ;;  %1969 = vmatpush3.bf16.msra.mxu1 %v1985_v8 }
  0x26   : > { %1891 = vmatmul.mubr.bf16.vlgmr.msra.gmra.mrb[0].mxu0 %v1987_v10  ;;  %1923 = vmatmul.mubr.bf16.vlgmr.msra.gmra.mrb[0].mxu1 %v2003_v12 }
  0x27   : > { %1894 = vmatprep.mubr.bf16.mxu0 %v1988_v11  ;;  %1926 = vmatprep.mubr.bf16.mxu1 %v2004_v13 }
  0x2e   : > { %1895 = vmatmul.mubr.bf16.gmra.mrb[4].mxu0 %v1989_v14  ;;  %1927 = vmatmul.mubr.bf16.gmra.mrb[4].mxu1 %v2005_v16 }
  0x2f   : > { %1898 = vmatprep.mubr.bf16.mxu0 %v1990_v15  ;;  %1930 = vmatprep.mubr.bf16.mxu1 %v2006_v17 }
  0x36   : > { %1899 = vmatmul.mubr.bf16.gmra.mrb[8].mxu0 %v1991_v18  ;;  %1931 = vmatmul.mubr.bf16.gmra.mrb[8].mxu1 %v2007_v19 }
  0x37   : > { %1902 = vmatprep.mubr.bf16.mxu0 %v1992_v20  ;;  %1934 = vmatprep.mubr.bf16.mxu1 %v2008_v21 }
  0x3e   : > { %1903 = vmatmul.mubr.bf16.gmra.mrb[12].mxu0 %v1993_v22  ;;  %1935 = vmatmul.mubr.bf16.gmra.mrb[12].mxu1 %v2009_v23 }
  0x3f   : > { %1906 = vmatprep.mubr.bf16.mxu0 %v1994_v24  ;;  %1938 = vmatprep.mubr.bf16.mxu1 %v2010_v25 }
  0x46   : > { %1907 = vmatmul.mubr.bf16.gmra.mrb[16].mxu0 %v1995_v26  ;;  %1939 = vmatmul.mubr.bf16.gmra.mrb[16].mxu1 %v2011_v27 }
  0x47   : > { %1910 = vmatprep.mubr.bf16.mxu0 %v1996_v28  ;;  %1942 = vmatprep.mubr.bf16.mxu1 %v2012_v29 }
  0x4e   : > { %1911 = vmatmul.mubr.bf16.gmra.mrb[20].mxu0 %v1997_v30  ;;  %1943 = vmatmul.mubr.bf16.gmra.mrb[20].mxu1 %v2013_v31 }
  0x4f   : > { %1914 = vmatprep.mubr.bf16.mxu0 %v1998_v32  ;;  %1946 = vmatprep.mubr.bf16.mxu1 %v2014_v33 }
  0x56   : > { %1915 = vmatmul.mubr.bf16.gmra.mrb[24].mxu0 %v1999_v34  ;;  %1947 = vmatmul.mubr.bf16.gmra.mrb[24].mxu1 %v2015_v35 }
  0x57   : > { %1918 = vmatprep.mubr.bf16.mxu0 %v2000_v36  ;;  %1950 = vmatprep.mubr.bf16.mxu1 %v2016_v37 }
  0x5e   : > { %1919 = vmatmul.mubr.bf16.gmra.mrb[28].mxu0 %v2001_v38  ;;  %1951 = vmatmul.mubr.bf16.gmra.mrb[28].mxu1 %v2017_v39 }
  0xf9   : > { %v1892_v40 = vpop.f32.mrb[0].mxu0  ;;  %v2128_v41 = vpop.f32.mrb[0].mxu1 }
  0xfa   : > { %v577_v42 = vpop.f32.mrb[1].mxu0  ;;  %v2130_v43 = vpop.f32.mrb[1].mxu1  ;;  %v1218_v55 = vmul.f32 %v1892_v40, %v1892_v40 }
  0xfb   : > { %v1893_v44 = vpop.f32.mrb[2].mxu0  ;;  %v2139_v45 = vpop.f32.mrb[2].mxu1  ;;  %v1216_v46 = vmul.f32 %v577_v42, %v577_v42 }
  0xfc   : > { %v1651_v47 = vpack.c.bf16 %v1893_v44, %v1892_v40  ;;  %v580_v48 = vpop.f32.mrb[3].mxu0  ;;  %v1731_v49 = vpack.c.bf16 %v2139_v45, %v2128_v41  ;;  %v2143_v50 = vpop.f32.mrb[3].mxu1  ;;  %v1219_v58 = vmul.f32 %v1893_v44, %v1893_v44 }
  0xfd   : > { %v1646_v51 = vpack.c.bf16 %v580_v48, %v577_v42  ;;  %v1152_v52 = vadd.f32 %v580_v48, %v577_v42  ;;  %v1217_v53 = vmul.f32 %v580_v48, %v580_v48  ;;  %v1726_v54 = vpack.c.bf16 %v2143_v50, %v2130_v43 }
  0xfe   : > { %1803 = vst [vmem:[%s2137_s14 + $0x8] sm:$0xff] %v1651_v47   ;;  %1819 = vst [vmem:[%s2137_s14 + $0x88] sm:$0xff] %v1731_v49  }
  0xff   : > { %1647 = vst [vmem:[%s2137_s14] sm:$0xff] %v1646_v51   ;;  %v1153_v56 = vadd.f32 %v1892_v40, %v1152_v52  ;;  %v1280_v57 = vadd.f32 %v1217_v53, %v1216_v46  ;;  %1818 = vst [vmem:[%s2137_s14 + $0x80] sm:$0xff] %v1726_v54  }
 0x101   : > { %v1281_v59 = vadd.f32 %v1280_v57, %v1218_v55  ;;  %v1896_v60 = vpop.f32.mrb[4].mxu0  ;;  %v1154_v61 = vadd.f32 %v1893_v44, %v1153_v56  ;;  %v2151_v62 = vpop.f32.mrb[4].mxu1 }
 0x102   : > { %v593_v63 = vpop.f32.mrb[5].mxu0  ;;  %v2153_v0 = vpop.f32.mrb[5].mxu1  ;;  %v1222_v15 = vmul.f32 %v1896_v60, %v1896_v60 }
 0x103   : > { %v1155_v1 = vadd.f32 %v1154_v61, %v593_v63  ;;  %v1220_v2 = vmul.f32 %v593_v63, %v593_v63  ;;  %v1282_v3 = vadd.f32 %v1281_v59, %v1219_v58  ;;  %v1897_v4 = vpop.f32.mrb[6].mxu0  ;;  %v2155_v5 = vpop.f32.mrb[6].mxu1 }
 0x104   : > { %v1661_v6 = vpack.c.bf16 %v1897_v4, %v1896_v60  ;;  %v596_v7 = vpop.f32.mrb[7].mxu0  ;;  %v1741_v8 = vpack.c.bf16 %v2155_v5, %v2151_v62  ;;  %v2159_v9 = vpop.f32.mrb[7].mxu1  ;;  %v1223_v18 = vmul.f32 %v1897_v4, %v1897_v4 }
 0x105   : > { %v1283_v10 = vadd.f32 %v1282_v3, %v1220_v2  ;;  %v1656_v11 = vpack.c.bf16 %v596_v7, %v593_v63  ;;  %v1156_v12 = vadd.f32 %v1155_v1, %v596_v7  ;;  %v1221_v13 = vmul.f32 %v596_v7, %v596_v7 }
 0x106   : > { %1805 = vst [vmem:[%s2137_s14 + $0x18] sm:$0xff] %v1661_v6   ;;  %1821 = vst [vmem:[%s2137_s14 + $0x98] sm:$0xff] %v1741_v8   ;;  %v1736_v14 = vpack.c.bf16 %v2159_v9, %v2153_v0 }
 0x107   : > { %1804 = vst [vmem:[%s2137_s14 + $0x10] sm:$0xff] %v1656_v11   ;;  %v1157_v16 = vadd.f32 %v1896_v60, %v1156_v12  ;;  %v1284_v17 = vadd.f32 %v1283_v10, %v1221_v13 }
 0x108   : > { %1820 = vst [vmem:[%s2137_s14 + $0x90] sm:$0xff] %v1736_v14  }
 0x109   : > { %v1285_v19 = vadd.f32 %v1284_v17, %v1222_v15  ;;  %v1900_v20 = vpop.f32.mrb[8].mxu0  ;;  %v1158_v21 = vadd.f32 %v1897_v4, %v1157_v16  ;;  %v2167_v22 = vpop.f32.mrb[8].mxu1 }
 0x10a   : > { %v609_v23 = vpop.f32.mrb[9].mxu0  ;;  %v2169_v24 = vpop.f32.mrb[9].mxu1  ;;  %v1226_v39 = vmul.f32 %v1900_v20, %v1900_v20 }
 0x10b   : > { %v1159_v25 = vadd.f32 %v1158_v21, %v609_v23  ;;  %v1224_v26 = vmul.f32 %v609_v23, %v609_v23  ;;  %v1286_v27 = vadd.f32 %v1285_v19, %v1223_v18  ;;  %v1901_v28 = vpop.f32.mrb[10].mxu0  ;;  %v2171_v29 = vpop.f32.mrb[10].mxu1 }
 0x10c   : > { %v1671_v30 = vpack.c.bf16 %v1901_v28, %v1900_v20  ;;  %v612_v31 = vpop.f32.mrb[11].mxu0  ;;  %v1751_v32 = vpack.c.bf16 %v2171_v29, %v2167_v22  ;;  %v2175_v33 = vpop.f32.mrb[11].mxu1  ;;  %v1227_v44 = vmul.f32 %v1901_v28, %v1901_v28 }
 0x10d   : > { %v1287_v34 = vadd.f32 %v1286_v27, %v1224_v26  ;;  %v1666_v35 = vpack.c.bf16 %v612_v31, %v609_v23  ;;  %v1160_v36 = vadd.f32 %v1159_v25, %v612_v31  ;;  %v1225_v37 = vmul.f32 %v612_v31, %v612_v31 }
 0x10e   : > { %1807 = vst [vmem:[%s2137_s14 + $0x28] sm:$0xff] %v1671_v30   ;;  %1823 = vst [vmem:[%s2137_s14 + $0xa8] sm:$0xff] %v1751_v32   ;;  %v1746_v38 = vpack.c.bf16 %v2175_v33, %v2169_v24 }
 0x10f   : > { %1806 = vst [vmem:[%s2137_s14 + $0x20] sm:$0xff] %v1666_v35   ;;  %v1161_v40 = vadd.f32 %v1900_v20, %v1160_v36  ;;  %v1288_v42 = vadd.f32 %v1287_v34, %v1225_v37 }
 0x110   : > { %1822 = vst [vmem:[%s2137_s14 + $0xa0] sm:$0xff] %v1746_v38  }
 0x111   : > { %v1289_v46 = vadd.f32 %v1288_v42, %v1226_v39  ;;  %v1904_v47 = vpop.f32.mrb[12].mxu0  ;;  %v1162_v48 = vadd.f32 %v1901_v28, %v1161_v40  ;;  %v2183_v49 = vpop.f32.mrb[12].mxu1 }
 0x112   : > { %v625_v51 = vpop.f32.mrb[13].mxu0  ;;  %v2185_v52 = vpop.f32.mrb[13].mxu1  ;;  %v1230_v6 = vmul.f32 %v1904_v47, %v1904_v47 }
 0x113   : > { %v1163_v53 = vadd.f32 %v1162_v48, %v625_v51  ;;  %v1228_v54 = vmul.f32 %v625_v51, %v625_v51  ;;  %v1290_v55 = vadd.f32 %v1289_v46, %v1227_v44  ;;  %v1905_v56 = vpop.f32.mrb[14].mxu0  ;;  %v2187_v57 = vpop.f32.mrb[14].mxu1 }
 0x114   : > { %v1681_v58 = vpack.c.bf16 %v1905_v56, %v1904_v47  ;;  %v628_v59 = vpop.f32.mrb[15].mxu0  ;;  %v1761_v60 = vpack.c.bf16 %v2187_v57, %v2183_v49  ;;  %v2191_v61 = vpop.f32.mrb[15].mxu1  ;;  %v1231_v10 = vmul.f32 %v1905_v56, %v1905_v56 }
 0x115   : > { %v1291_v63 = vadd.f32 %v1290_v55, %v1228_v54  ;;  %v1676_v1 = vpack.c.bf16 %v628_v59, %v625_v51  ;;  %v1164_v2 = vadd.f32 %v1163_v53, %v628_v59  ;;  %v1229_v3 = vmul.f32 %v628_v59, %v628_v59 }
 0x116   : > { %1809 = vst [vmem:[%s2137_s14 + $0x38] sm:$0xff] %v1681_v58   ;;  %1825 = vst [vmem:[%s2137_s14 + $0xb8] sm:$0xff] %v1761_v60   ;;  %v1756_v4 = vpack.c.bf16 %v2191_v61, %v2185_v52 }
 0x117   : > { %1808 = vst [vmem:[%s2137_s14 + $0x30] sm:$0xff] %v1676_v1   ;;  %v1165_v7 = vadd.f32 %v1904_v47, %v1164_v2  ;;  %v1292_v8 = vadd.f32 %v1291_v63, %v1229_v3 }
 0x118   : > { %1824 = vst [vmem:[%s2137_s14 + $0xb0] sm:$0xff] %v1756_v4  }
 0x119   : > { %v1293_v11 = vadd.f32 %v1292_v8, %v1230_v6  ;;  %v1908_v12 = vpop.f32.mrb[16].mxu0  ;;  %v1166_v13 = vadd.f32 %v1905_v56, %v1165_v7  ;;  %v2199_v14 = vpop.f32.mrb[16].mxu1 }
 0x11a   : > { %v641_v15 = vpop.f32.mrb[17].mxu0  ;;  %v2201_v16 = vpop.f32.mrb[17].mxu1  ;;  %v1234_v35 = vmul.f32 %v1908_v12, %v1908_v12 }
 0x11b   : > { %v1167_v17 = vadd.f32 %v1166_v13, %v641_v15  ;;  %v1232_v18 = vmul.f32 %v641_v15, %v641_v15  ;;  %v1294_v19 = vadd.f32 %v1293_v11, %v1231_v10  ;;  %v1909_v20 = vpop.f32.mrb[18].mxu0  ;;  %v2203_v21 = vpop.f32.mrb[18].mxu1 }
 0x11c   : > { %v1691_v23 = vpack.c.bf16 %v1909_v20, %v1908_v12  ;;  %v644_v25 = vpop.f32.mrb[19].mxu0  ;;  %v1771_v26 = vpack.c.bf16 %v2203_v21, %v2199_v14  ;;  %v2207_v27 = vpop.f32.mrb[19].mxu1  ;;  %v1235_v38 = vmul.f32 %v1909_v20, %v1909_v20 }
 0x11d   : > { %v1295_v28 = vadd.f32 %v1294_v19, %v1232_v18  ;;  %v1686_v30 = vpack.c.bf16 %v644_v25, %v641_v15  ;;  %v1168_v31 = vadd.f32 %v1167_v17, %v644_v25  ;;  %v1233_v32 = vmul.f32 %v644_v25, %v644_v25 }
 0x11e   : > { %1811 = vst [vmem:[%s2137_s14 + $0x48] sm:$0xff] %v1691_v23   ;;  %1827 = vst [vmem:[%s2137_s14 + $0xc8] sm:$0xff] %v1771_v26   ;;  %v1766_v34 = vpack.c.bf16 %v2207_v27, %v2201_v16 }
 0x11f   : > { %1810 = vst [vmem:[%s2137_s14 + $0x40] sm:$0xff] %v1686_v30   ;;  %v1169_v36 = vadd.f32 %v1908_v12, %v1168_v31  ;;  %v1296_v37 = vadd.f32 %v1295_v28, %v1233_v32 }
 0x120   : > { %1826 = vst [vmem:[%s2137_s14 + $0xc0] sm:$0xff] %v1766_v34  }
 0x121   : > { %v1297_v39 = vadd.f32 %v1296_v37, %v1234_v35  ;;  %v1912_v40 = vpop.f32.mrb[20].mxu0  ;;  %v1170_v42 = vadd.f32 %v1909_v20, %v1169_v36  ;;  %v2215_v44 = vpop.f32.mrb[20].mxu1 }
 0x122   : > { %v657_v46 = vpop.f32.mrb[21].mxu0  ;;  %v2217_v47 = vpop.f32.mrb[21].mxu1  ;;  %v1238_v6 = vmul.f32 %v1912_v40, %v1912_v40 }
 0x123   : > { %v1171_v48 = vadd.f32 %v1170_v42, %v657_v46  ;;  %v1236_v51 = vmul.f32 %v657_v46, %v657_v46  ;;  %v1298_v53 = vadd.f32 %v1297_v39, %v1235_v38  ;;  %v1913_v54 = vpop.f32.mrb[22].mxu0  ;;  %v2219_v55 = vpop.f32.mrb[22].mxu1 }
 0x124   : > { %v1701_v56 = vpack.c.bf16 %v1913_v54, %v1912_v40  ;;  %v660_v58 = vpop.f32.mrb[23].mxu0  ;;  %v1781_v59 = vpack.c.bf16 %v2219_v55, %v2215_v44  ;;  %v2223_v60 = vpop.f32.mrb[23].mxu1  ;;  %v1239_v10 = vmul.f32 %v1913_v54, %v1913_v54 }
 0x125   : > { %v1299_v63 = vadd.f32 %v1298_v53, %v1236_v51  ;;  %v1696_v1 = vpack.c.bf16 %v660_v58, %v657_v46  ;;  %v1172_v2 = vadd.f32 %v1171_v48, %v660_v58  ;;  %v1237_v3 = vmul.f32 %v660_v58, %v660_v58 }
 0x126   : > { %1813 = vst [vmem:[%s2137_s14 + $0x58] sm:$0xff] %v1701_v56   ;;  %1829 = vst [vmem:[%s2137_s14 + $0xd8] sm:$0xff] %v1781_v59   ;;  %v1776_v4 = vpack.c.bf16 %v2223_v60, %v2217_v47 }
 0x127   : > { %1812 = vst [vmem:[%s2137_s14 + $0x50] sm:$0xff] %v1696_v1   ;;  %v1173_v7 = vadd.f32 %v1912_v40, %v1172_v2  ;;  %v1300_v8 = vadd.f32 %v1299_v63, %v1237_v3 }
 0x128   : > { %1828 = vst [vmem:[%s2137_s14 + $0xd0] sm:$0xff] %v1776_v4  }
 0x129   : > { %v1301_v11 = vadd.f32 %v1300_v8, %v1238_v6  ;;  %v1916_v12 = vpop.f32.mrb[24].mxu0  ;;  %v1174_v13 = vadd.f32 %v1913_v54, %v1173_v7  ;;  %v2231_v15 = vpop.f32.mrb[24].mxu1 }
 0x12a   : > { %v673_v17 = vpop.f32.mrb[25].mxu0  ;;  %v2233_v18 = vpop.f32.mrb[25].mxu1  ;;  %v1242_v39 = vmul.f32 %v1916_v12, %v1916_v12 }
 0x12b   : > { %v1175_v19 = vadd.f32 %v1174_v13, %v673_v17  ;;  %v1240_v20 = vmul.f32 %v673_v17, %v673_v17  ;;  %v1302_v23 = vadd.f32 %v1301_v11, %v1239_v10  ;;  %v1917_v25 = vpop.f32.mrb[26].mxu0  ;;  %v2235_v26 = vpop.f32.mrb[26].mxu1 }
 0x12c   : > { %v1711_v28 = vpack.c.bf16 %v1917_v25, %v1916_v12  ;;  %v676_v30 = vpop.f32.mrb[27].mxu0  ;;  %v1791_v31 = vpack.c.bf16 %v2235_v26, %v2231_v15  ;;  %v2239_v32 = vpop.f32.mrb[27].mxu1  ;;  %v1243_v46 = vmul.f32 %v1917_v25, %v1917_v25 }
 0x12d   : > { %v1303_v34 = vadd.f32 %v1302_v23, %v1240_v20  ;;  %v1706_v35 = vpack.c.bf16 %v676_v30, %v673_v17  ;;  %v1176_v36 = vadd.f32 %v1175_v19, %v676_v30  ;;  %v1241_v37 = vmul.f32 %v676_v30, %v676_v30 }
 0x12e   : > { %1815 = vst [vmem:[%s2137_s14 + $0x68] sm:$0xff] %v1711_v28   ;;  %1831 = vst [vmem:[%s2137_s14 + $0xe8] sm:$0xff] %v1791_v31   ;;  %v1786_v38 = vpack.c.bf16 %v2239_v32, %v2233_v18  ;;  %v1248_v31 = vmul.f32 %v2130_v43, %v2130_v43 }
 0x12f   : > { %1814 = vst [vmem:[%s2137_s14 + $0x60] sm:$0xff] %v1706_v35   ;;  %v1177_v40 = vadd.f32 %v1916_v12, %v1176_v36  ;;  %v1304_v42 = vadd.f32 %v1303_v34, %v1241_v37 }
 0x130   : > { %1830 = vst [vmem:[%s2137_s14 + $0xe0] sm:$0xff] %v1786_v38   ;;  %v1249_v38 = vmul.f32 %v2143_v50, %v2143_v50 }
 0x131   : > { %v1305_v48 = vadd.f32 %v1304_v42, %v1242_v39  ;;  %v1920_v51 = vpop.f32.mrb[28].mxu0  ;;  %v1178_v53 = vadd.f32 %v1917_v25, %v1177_v40  ;;  %v2247_v54 = vpop.f32.mrb[28].mxu1  ;;  %v1250_v39 = vmul.f32 %v2128_v41, %v2128_v41 }
 0x132   : > { %v689_v56 = vpop.f32.mrb[29].mxu0  ;;  %v2249_v58 = vpop.f32.mrb[29].mxu1  ;;  %v1246_v19 = vmul.f32 %v1920_v51, %v1920_v51 }
 0x133   : > { %v1179_v59 = vadd.f32 %v1178_v53, %v689_v56  ;;  %v1244_v63 = vmul.f32 %v689_v56, %v689_v56  ;;  %v1306_v1 = vadd.f32 %v1305_v48, %v1243_v46  ;;  %v1921_v2 = vpop.f32.mrb[30].mxu0  ;;  %v2251_v3 = vpop.f32.mrb[30].mxu1  ;;  %v1251_v46 = vmul.f32 %v2139_v45, %v2139_v45 }
 0x134   : > { %v1721_v4 = vpack.c.bf16 %v1921_v2, %v1920_v51  ;;  %v692_v6 = vpop.f32.mrb[31].mxu0  ;;  %v1801_v7 = vpack.c.bf16 %v2251_v3, %v2247_v54  ;;  %v2255_v8 = vpop.f32.mrb[31].mxu1  ;;  %v1247_v25 = vmul.f32 %v1921_v2, %v1921_v2 }
 0x135   : > { %v1307_v10 = vadd.f32 %v1306_v1, %v1244_v63  ;;  %v1716_v11 = vpack.c.bf16 %v692_v6, %v689_v56  ;;  %v1180_v12 = vadd.f32 %v1179_v59, %v692_v6  ;;  %v1245_v13 = vmul.f32 %v692_v6, %v692_v6 }
 0x136   : > { %1817 = vst [vmem:[%s2137_s14 + $0x78] sm:$0xff] %v1721_v4   ;;  %1833 = vst [vmem:[%s2137_s14 + $0xf8] sm:$0xff] %v1801_v7   ;;  %v1796_v17 = vpack.c.bf16 %v2255_v8, %v2249_v58  ;;  %v1253_v63 = vmul.f32 %v2159_v9, %v2159_v9 }
 0x137   : > { %1816 = vst [vmem:[%s2137_s14 + $0x70] sm:$0xff] %v1716_v11   ;;  %v1181_v20 = vadd.f32 %v1920_v51, %v1180_v12  ;;  %v1308_v23 = vadd.f32 %v1307_v10, %v1245_v13  ;;  %v1257_v12 = vmul.f32 %v2175_v33, %v2175_v33 }
 0x138   : > { %1832 = vst [vmem:[%s2137_s14 + $0xf0] sm:$0xff] %v1796_v17  }
 0x139   : > { %v1309_v28 = vadd.f32 %v1308_v23, %v1246_v19  ;;  %v1182_v30 = vadd.f32 %v1921_v2, %v1181_v20 }
 0x13b   : > { %v1183_v34 = vadd.f32 %v1182_v30, %v2130_v43  ;;  %v1310_v35 = vadd.f32 %v1309_v28, %v1247_v25  ;;  %v1252_v43 = vmul.f32 %v2153_v0, %v2153_v0  ;;  %v1261_v30 = vmul.f32 %v2191_v61, %v2191_v61 }
 0x13d   : > { %v1311_v36 = vadd.f32 %v1310_v35, %v1248_v31  ;;  %v1184_v37 = vadd.f32 %v1183_v34, %v2143_v50 }
 0x13f   : > { %v1185_v40 = vadd.f32 %v2128_v41, %v1184_v37  ;;  %v1312_v42 = vadd.f32 %v1311_v36, %v1249_v38  ;;  %v1254_v41 = vmul.f32 %v2151_v62, %v2151_v62 }
 0x141   : > { %v1313_v48 = vadd.f32 %v1312_v42, %v1250_v39  ;;  %v1186_v51 = vadd.f32 %v2139_v45, %v1185_v40  ;;  %v1255_v45 = vmul.f32 %v2155_v5, %v2155_v5  ;;  %v1265_v40 = vmul.f32 %v2207_v27, %v2207_v27 }
 0x143   : > { %v1187_v53 = vadd.f32 %v1186_v51, %v2153_v0  ;;  %v1314_v56 = vadd.f32 %v1313_v48, %v1251_v46  ;;  %v1256_v0 = vmul.f32 %v2169_v24, %v2169_v24 }
 0x145   : > { %v1315_v59 = vadd.f32 %v1314_v56, %v1252_v43  ;;  %v1188_v50 = vadd.f32 %v1187_v53, %v2159_v9 }
 0x147   : > { %v1189_v1 = vadd.f32 %v2151_v62, %v1188_v50  ;;  %v1316_v2 = vadd.f32 %v1315_v59, %v1253_v63  ;;  %v1258_v62 = vmul.f32 %v2167_v22, %v2167_v22  ;;  %v1270_v59 = vmul.f32 %v2215_v44, %v2215_v44 }
 0x149   : > { %v1317_v4 = vadd.f32 %v1316_v2, %v1254_v41  ;;  %v1190_v6 = vadd.f32 %v2155_v5, %v1189_v1  ;;  %v1259_v5 = vmul.f32 %v2171_v29, %v2171_v29  ;;  %v1272_v1 = vmul.f32 %v2233_v18, %v2233_v18 }
 0x14b   : > { %v1191_v7 = vadd.f32 %v1190_v6, %v2169_v24  ;;  %v1318_v10 = vadd.f32 %v1317_v4, %v1255_v45  ;;  %v1260_v24 = vmul.f32 %v2185_v52, %v2185_v52  ;;  %v1274_v6 = vmul.f32 %v2231_v15, %v2231_v15 }
 0x14d   : > { %v1319_v11 = vadd.f32 %v1318_v10, %v1256_v0  ;;  %v1192_v9 = vadd.f32 %v1191_v7, %v2175_v33 }
 0x14f   : > { %v1193_v13 = vadd.f32 %v2167_v22, %v1192_v9  ;;  %v1320_v17 = vadd.f32 %v1319_v11, %v1257_v12  ;;  %v1262_v22 = vmul.f32 %v2183_v49, %v2183_v49  ;;  %v1276_v11 = vmul.f32 %v2249_v58, %v2249_v58 }
 0x151   : > { %v1321_v19 = vadd.f32 %v1320_v17, %v1258_v62  ;;  %v1194_v20 = vadd.f32 %v2171_v29, %v1193_v13  ;;  %v1263_v29 = vmul.f32 %v2187_v57, %v2187_v57  ;;  %v1278_v13 = vmul.f32 %v2247_v54, %v2247_v54 }
 0x153   : > { %v1195_v23 = vadd.f32 %v1194_v20, %v2185_v52  ;;  %v1322_v25 = vadd.f32 %v1321_v19, %v1259_v5  ;;  %v1264_v52 = vmul.f32 %v2201_v16, %v2201_v16 }
 0x155   : > { %v1323_v28 = vadd.f32 %v1322_v25, %v1260_v24  ;;  %v1196_v33 = vadd.f32 %v1195_v23, %v2191_v61 }
 0x157   : > { %v1197_v31 = vadd.f32 %v2183_v49, %v1196_v33  ;;  %v1324_v34 = vadd.f32 %v1323_v28, %v1261_v30  ;;  %v1266_v49 = vmul.f32 %v2199_v14, %v2199_v14 }
 0x159   : > { %v1325_v35 = vadd.f32 %v1324_v34, %v1262_v22  ;;  %v1198_v36 = vadd.f32 %v2187_v57, %v1197_v31  ;;  %v1267_v57 = vmul.f32 %v2203_v21, %v2203_v21 }
 0x15b   : > { %v1199_v37 = vadd.f32 %v1198_v36, %v2201_v16  ;;  %v1326_v38 = vadd.f32 %v1325_v35, %v1263_v29  ;;  %v1268_v16 = vmul.f32 %v2217_v47, %v2217_v47 }
 0x15d   : > { %v1327_v39 = vadd.f32 %v1326_v38, %v1264_v52  ;;  %v1200_v61 = vadd.f32 %v1199_v37, %v2207_v27 }
 0x15f   : > { %v1201_v42 = vadd.f32 %v2199_v14, %v1200_v61  ;;  %v1328_v46 = vadd.f32 %v1327_v39, %v1265_v40  ;;  %v1269_v14 = vmul.f32 %v2223_v60, %v2223_v60 }
 0x161   : > { %v1329_v48 = vadd.f32 %v1328_v46, %v1266_v49  ;;  %v1202_v51 = vadd.f32 %v2203_v21, %v1201_v42  ;;  %v1271_v21 = vmul.f32 %v2219_v55, %v2219_v55 }
 0x163   : > { %v1203_v43 = vadd.f32 %v1202_v51, %v2217_v47  ;;  %v1330_v53 = vadd.f32 %v1329_v48, %v1267_v57 }
 0x165   : > { %v1331_v27 = vadd.f32 %v1330_v53, %v1268_v16  ;;  %v1204_v56 = vadd.f32 %v1203_v43, %v2223_v60 }
 0x167   : > { %v1205_v50 = vadd.f32 %v2215_v44, %v1204_v56  ;;  %v1332_v63 = vadd.f32 %v1331_v27, %v1269_v14  ;;  %v1273_v44 = vmul.f32 %v2239_v32, %v2239_v32 }
 0x169   : > { %v1333_v41 = vadd.f32 %v1332_v63, %v1270_v59  ;;  %v1206_v47 = vadd.f32 %v2219_v55, %v1205_v50  ;;  %v1275_v55 = vmul.f32 %v2235_v26, %v2235_v26 }
 0x16b   : > { %v1207_v2 = vadd.f32 %v1206_v47, %v2233_v18  ;;  %v1334_v45 = vadd.f32 %v1333_v41, %v1271_v21 }
 0x16d   : > { %v1335_v60 = vadd.f32 %v1334_v45, %v1272_v1  ;;  %v1208_v4 = vadd.f32 %v1207_v2, %v2239_v32 }
 0x16f   : > { %v1209_v0 = vadd.f32 %v2231_v15, %v1208_v4  ;;  %v1336_v7 = vadd.f32 %v1335_v60, %v1273_v44  ;;  %v1277_v15 = vmul.f32 %v2255_v8, %v2255_v8 }
 0x171   : > { %v1337_v10 = vadd.f32 %v1336_v7, %v1274_v6  ;;  %v1210_v18 = vadd.f32 %v2235_v26, %v1209_v0 }
 0x173   : > { %v1211_v9 = vadd.f32 %v1210_v18, %v2249_v58  ;;  %v1338_v32 = vadd.f32 %v1337_v10, %v1275_v55  ;;  %v1279_v58 = vmul.f32 %v2251_v3, %v2251_v3 }
 0x175   : > { %v1339_v12 = vadd.f32 %v1338_v32, %v1276_v11  ;;  %v1212_v62 = vadd.f32 %v1211_v9, %v2255_v8 }
 0x177   : > { %v1213_v17 = vadd.f32 %v2247_v54, %v1212_v62  ;;  %v1340_v26 = vadd.f32 %v1339_v12, %v1277_v15 }
 0x179   : > { %v1214_v5 = vadd.f32 %v2251_v3, %v1213_v17  ;;  %v1341_v19 = vadd.f32 %v1340_v26, %v1278_v13 }
 0x17b   : > { %1215 = vst [vmem:[%s217_s20] sm:$0xff] %v1214_v5  ;;  %v1342_v8 = vadd.f32 %v1341_v19, %v1279_v58 }
 0x17d   : > { %1343 = vst [vmem:[%s221_s22] sm:$0xff] %v1342_v8 }
 0x17e PF: > { %s15_s15 = sadd.s32 1, %s2024_s15  }
 0x17f   : > { %p12_p5 = scmp.ge.s32.totalorder %s15_s15, 4  }
 0x181   :  { %14 = sbr.rel (!%p12_p5) target bundleno = 1 (0x1), region = 82 }

</bundles_post_ra>
